<compile_context>
chip_gen: v7x
topology: tpu7x:2x2x1
jax: 0.10.0
libtpu: 0.0.40
codegen_flags: <defaults>
</compile_context>

<pallas_src>
import jax
import jax.numpy as jnp
from jax.experimental import pallas as pl
from jax.experimental.pallas import tpu as pltpu


# ----------------------------------------------------------------------------
# Helpers
# ----------------------------------------------------------------------------
def _round_up(x, m):
    return (x + m - 1) // m * m


def _largest_tile(dim_p, unit, cap):
    """Largest multiple of `unit` that divides `dim_p` exactly and is <= cap."""
    q = dim_p // unit
    best = 1
    m = 1
    max_m = min(q, cap // unit)
    while m <= max_m:
        if q % m == 0:
            best = m
        m += 1
    return best * unit


# ----------------------------------------------------------------------------
# Pallas tiled GEMM kernel with fused bias + activation epilogue
# ----------------------------------------------------------------------------
def _make_matmul_kernel(act, has_slope):
    def kernel(x_ref, w_ref, b_ref, *rest):
        if has_slope:
            s_ref, o_ref, acc_ref = rest
        else:
            o_ref, acc_ref = rest
        k = pl.program_id(2)

        @pl.when(k == 0)
        def _():
            acc_ref[...] = jnp.zeros_like(acc_ref)

        acc_ref[...] += jnp.dot(
            x_ref[...], w_ref[...], preferred_element_type=jnp.float32
        )

        @pl.when(k == pl.num_programs(2) - 1)
        def _():
            y = acc_ref[...] + b_ref[...]
            if act == "relu":
                y = jnp.maximum(y, 0.0)
            elif act == "prelu":
                y = jnp.where(y >= 0.0, y, y * s_ref[...])
            o_ref[...] = y.astype(o_ref.dtype)

    return kernel


def matmul_bias_act(x, w_packed, b_packed, slope_packed=None, act="none",
                    out_dtype=jnp.float32, n_out=None):
    """y[:M, :n_out] = act(x @ W + b) as a tiled Pallas TPU GEMM.

    x:            (M, K) f32/bf16 activations (K <= w_packed.shape[0]).
    w_packed:     (Kp, Np) bf16, pre-padded to 128-multiples, (K, N) layout.
    b_packed:     (1, Np) f32.
    slope_packed: (1, Np) f32 per-channel PReLU slope (only for act="prelu").
    """
    M, K = x.shape
    Kp, Np = w_packed.shape
    N = Np if n_out is None else n_out

    # Tile selection: tk/tn divide the pre-padded weight dims exactly; tm
    # covers the (small) M dimension in as few tiles as possible.
    if M <= 2048:
        tm = _round_up(M, 16)          # bf16-friendly sublane multiple
        Mp = tm
    else:
        tm = 256
        Mp = _round_up(M, tm)
    tk = _largest_tile(Kp, 128, 2048)  # large reduction tile: weight streaming
    tn = _largest_tile(Np, 128, 1024)  # lane-dense output tile

    x = x.astype(jnp.bfloat16)
    if (Mp, Kp) != (M, K):
        x = jnp.pad(x, ((0, Mp - M), (0, Kp - K)))

    grid = (Mp // tm, Np // tn, Kp // tk)
    has_slope = act == "prelu"

    in_specs = [
        pl.BlockSpec((tm, tk), lambda i, j, k: (i, k)),
        pl.BlockSpec((tk, tn), lambda i, j, k: (k, j)),
        pl.BlockSpec((1, tn), lambda i, j, k: (0, j)),
    ]
    operands = [x, w_packed, b_packed]
    if has_slope:
        in_specs.append(pl.BlockSpec((1, tn), lambda i, j, k: (0, j)))
        operands.append(slope_packed)

    out_bytes = Mp * Np * (2 if out_dtype == jnp.bfloat16 else 4)
    cost = pl.CostEstimate(
        flops=2 * Mp * Np * Kp,
        transcendentals=0,
        bytes_accessed=(Mp * Kp + Kp * Np) * 2 + out_bytes,
    )

    out = pl.pallas_call(
        _make_matmul_kernel(act, has_slope),
        out_shape=jax.ShapeDtypeStruct((Mp, Np), out_dtype),
        grid_spec=pltpu.PrefetchScalarGridSpec(
            num_scalar_prefetch=0,
            grid=grid,
            in_specs=in_specs,
            out_specs=pl.BlockSpec((tm, tn), lambda i, j, k: (i, j)),
            scratch_shapes=[pltpu.VMEM((tm, tn), jnp.float32)],
        ),
        compiler_params=pltpu.CompilerParams(
            dimension_semantics=("parallel", "parallel", "arbitrary"),
            vmem_limit_bytes=32 * 1024 * 1024,
        ),
        cost_estimate=cost,
    )(*operands)
    return out[:M, :N]


# ----------------------------------------------------------------------------
# Layer glue (im2col / pooling); all matmuls go through the Pallas kernel
# ----------------------------------------------------------------------------
def conv3x3_relu(x_nhwc, layer):
    """3x3 conv, stride 1, pad 1, fused ReLU via im2col + Pallas GEMM."""
    # TODO(synk): im2col patches are materialized by XLA; for large feature
    # maps fold the 9 taps into the GEMM reduction axis instead.
    N, H, W, C = x_nhwc.shape
    xp = jnp.pad(x_nhwc, ((0, 0), (1, 1), (1, 1), (0, 0)))
    patches = jnp.concatenate(
        [xp[:, dy:dy + H, dx:dx + W, :] for dy in range(3) for dx in range(3)],
        axis=-1,
    )  # (N, H, W, 9*C), feature order (kh, kw, cin) matches packed weights
    mat = patches.reshape(N * H * W, 9 * C)
    y = matmul_bias_act(mat, layer["w"], layer["b"], act="relu",
                        out_dtype=jnp.bfloat16, n_out=layer["cout"])
    return y.reshape(N, H, W, layer["cout"])


def maxpool2x2(x):
    N, H, W, C = x.shape
    return x.reshape(N, H // 2, 2, W // 2, 2, C).max(axis=(2, 4))


def adaptive_avg_pool(x, out_hw=7):
    """nn.AdaptiveAvgPool2d((7,7)) semantics (floor/ceil windows), NHWC."""
    N, H, W, C = x.shape
    if H == out_hw and W == out_hw:
        return x  # identity for this config; skip 49 tiny slice+mean ops
    rows = []
    for i in range(out_hw):
        h0, h1 = (i * H) // out_hw, -((-(i + 1) * H) // out_hw)
        cols = []
        for j in range(out_hw):
            w0, w1 = (j * W) // out_hw, -((-(j + 1) * W) // out_hw)
            cols.append(x[:, h0:h1, w0:w1, :].mean(axis=(1, 2)))
        rows.append(jnp.stack(cols, axis=1))
    return jnp.stack(rows, axis=1)


# ----------------------------------------------------------------------------
# VGG model
# ----------------------------------------------------------------------------
CFG = [64, "M", 128, "M", 256, 512]  # small VGG-style features, ends at 512 ch


def init_params(key, num_classes=10, in_channels=3):
    params = {"features": []}
    c_in = in_channels
    for v in CFG:
        if v == "M":
            params["features"].append("M")
            continue
        key, k1 = jax.random.split(key)
        std = (2.0 / (v * 3 * 3)) ** 0.5  # kaiming normal, fan_out, relu
        w = std * jax.random.normal(k1, (v, c_in, 3, 3), jnp.float32)
        # Pre-pack once: (kh, kw, cin, cout) -> (9*cin, cout), pad to
        # 128-multiples, store bf16 (no per-forward transpose/pad).
        wm = jnp.transpose(w, (2, 3, 1, 0)).reshape(9 * c_in, v)
        kp = _round_up(9 * c_in, 128)
        np_ = _round_up(v, 128)
        wm = jnp.pad(wm, ((0, kp - 9 * c_in), (0, np_ - v))).astype(jnp.bfloat16)
        b = jnp.zeros((1, np_), jnp.float32)
        params["features"].append({"w": wm, "b": b, "cin": c_in, "cout": v})
        c_in = v

    def linear(k, fan_in, fan_out, prelu):
        # nn.Linear init: N(0, 0.01) weights, zero bias; stored directly in
        # (K, N) GEMM layout so there is no call-time transpose of ~400 MB.
        w = 0.01 * jax.random.normal(k, (fan_in, fan_out), jnp.float32)
        kp = _round_up(fan_in, 128)
        np_ = _round_up(fan_out, 128)
        w = jnp.pad(w, ((0, kp - fan_in), (0, np_ - fan_out))).astype(jnp.bfloat16)
        b = jnp.zeros((1, np_), jnp.float32)
        layer = {"w": w, "b": b, "n": fan_out}
        if prelu:
            # TODO(synk): `non_linearity` ctor arg is unspecified; modeled as
            # channel-wise PReLU with slope 0.25, fused into the GEMM kernel.
            layer["slope"] = jnp.full((1, np_), 0.25, jnp.float32)
        return layer

    key, k1, k2, k3 = jax.random.split(key, 4)
    params["fc1"] = linear(k1, 512 * 7 * 7, 4096, prelu=True)
    params["fc2"] = linear(k2, 4096, 4096, prelu=True)
    params["fc3"] = linear(k3, 4096, num_classes, prelu=False)
    return params


def vgg_forward(params, x_nchw):
    # layout: input is NCHW (PyTorch convention); compute runs in NHWC.
    x = jnp.transpose(x_nchw.astype(jnp.float32), (0, 2, 3, 1))

    # features
    for layer in params["features"]:
        if isinstance(layer, str) and layer == "M":
            x = maxpool2x2(x)
        else:
            x = conv3x3_relu(x, layer)

    # avgpool to (7, 7) -- identity here since the feature map is already 7x7
    x = adaptive_avg_pool(x, 7)

    # flatten in PyTorch NCHW order: (N, C*7*7)
    x = jnp.transpose(x, (0, 3, 1, 2)).reshape(x.shape[0], -1)

    # classifier (Dropout layers are identity in eval mode)
    # TODO(synk): nn.Dropout omitted (inference-mode identity).
    fc1, fc2, fc3 = params["fc1"], params["fc2"], params["fc3"]
    x = matmul_bias_act(x, fc1["w"], fc1["b"], fc1["slope"], act="prelu",
                        out_dtype=jnp.bfloat16, n_out=fc1["n"])
    x = matmul_bias_act(x, fc2["w"], fc2["b"], fc2["slope"], act="prelu",
                        out_dtype=jnp.bfloat16, n_out=fc2["n"])
    x = matmul_bias_act(x, fc3["w"], fc3["b"], act="none",
                        out_dtype=jnp.float32, n_out=fc3["n"])
    return x


if __name__ == "__main__":
    key = jax.random.PRNGKey(0)
    pkey, xkey = jax.random.split(key)
    params = init_params(pkey, num_classes=10, in_channels=3)
    x = jax.random.normal(xkey, (2, 3, 28, 28), jnp.float32)

    out = vgg_forward(params, x)
    out = jax.block_until_ready(out)
    assert out.shape == (2, 10)
    assert bool(jnp.all(jnp.isfinite(out)))
    print("KERNEL_OK")
</pallas_src>

<mosaic_0001>
module attributes {stable_mosaic.version = 11 : i64} {
  func.func @kernel(%arg0: i32, %arg1: i32, %arg2: i32, %arg3: memref<1568x128xbf16, #tpu.memory_space<vmem>>, %arg4: memref<128x128xbf16, #tpu.memory_space<vmem>>, %arg5: memref<1x128xf32, #tpu.memory_space<vmem>>, %arg6: memref<1568x128xbf16, #tpu.memory_space<vmem>>, %arg7: memref<1568x128xf32, #tpu.memory_space<vmem>>) attributes {dimension_semantics = [#tpu.dimension_semantics<parallel>, #tpu.dimension_semantics<parallel>, #tpu.dimension_semantics<arbitrary>], iteration_bounds = array<i64: 1, 1, 1>, scalar_prefetch = 0 : i64, scratch_operands = 1 : i64, tpu.core_type = #tpu.core_type<tc>, window_params = [{transform_indices = @transform_0, window_bounds = array<i64: 1568, 128>}, {transform_indices = @transform_1, window_bounds = array<i64: 128, 128>}, {transform_indices = @transform_2, window_bounds = array<i64: 1, 128>}, {transform_indices = @transform_3, window_bounds = array<i64: 1568, 128>}]} {
    %c0_i32 = arith.constant 0 : i32
    %0 = arith.cmpi eq, %arg2, %c0_i32 : i32
    %1 = arith.extui %0 : i1 to i32
    %c0_i32_0 = arith.constant 0 : i32
    %2 = arith.cmpi ne, %1, %c0_i32_0 : i32
    scf.if %2 {
      %cst_10 = arith.constant 0.000000e+00 : f32
      %12 = vector.broadcast %cst_10 : f32 to vector<1568x128xf32>
      %c0_11 = arith.constant 0 : index
      %c0_12 = arith.constant 0 : index
      %13 = vector.load %arg7[%c0_11, %c0_12] : memref<1568x128xf32, #tpu.memory_space<vmem>>, vector<1568x128xf32>
      tpu.vector_store %arg7[%c0_11, %c0_12], %12 {strides = array<i32>} : memref<1568x128xf32, #tpu.memory_space<vmem>>, vector<1568x128xf32>,
    } else {
    }
    %c0 = arith.constant 0 : index
    %c0_1 = arith.constant 0 : index
    %3 = vector.load %arg7[%c0, %c0_1] : memref<1568x128xf32, #tpu.memory_space<vmem>>, vector<1568x128xf32>
    %c0_2 = arith.constant 0 : index
    %c0_3 = arith.constant 0 : index
    %4 = vector.load %arg3[%c0_2, %c0_3] : memref<1568x128xbf16, #tpu.memory_space<vmem>>, vector<1568x128xbf16>
    %c0_4 = arith.constant 0 : index
    %c0_5 = arith.constant 0 : index
    %5 = vector.load %arg4[%c0_4, %c0_5] : memref<128x128xbf16, #tpu.memory_space<vmem>>, vector<128x128xbf16>
    %cst = arith.constant dense<0.000000e+00> : vector<1568x128xf32>
    %6 = tpu.matmul %4, %5, %cst {dimension_numbers = #tpu.dot_dimension_numbers<[1], [0], [0], [1], [0, 0, 1, 1], [], []>} : vector<1568x128xbf16>, vector<128x128xbf16>, vector<1568x128xf32> -> vector<1568x128xf32>
    %7 = arith.addf %3, %6 : vector<1568x128xf32>
    %c0_6 = arith.constant 0 : index
    %c0_7 = arith.constant 0 : index
    %8 = vector.load %arg7[%c0_6, %c0_7] : memref<1568x128xf32, #tpu.memory_space<vmem>>, vector<1568x128xf32>
    tpu.vector_store %arg7[%c0_6, %c0_7], %7 {strides = array<i32>} : memref<1568x128xf32, #tpu.memory_space<vmem>>, vector<1568x128xf32>,
    %c0_i32_8 = arith.constant 0 : i32
    %9 = arith.cmpi eq, %arg2, %c0_i32_8 : i32
    %10 = arith.extui %9 : i1 to i32
    %c0_i32_9 = arith.constant 0 : i32
    %11 = arith.cmpi ne, %10, %c0_i32_9 : i32
    scf.if %11 {
      %c0_10 = arith.constant 0 : index
      %c0_11 = arith.constant 0 : index
      %12 = vector.load %arg7[%c0_10, %c0_11] : memref<1568x128xf32, #tpu.memory_space<vmem>>, vector<1568x128xf32>
      %c0_12 = arith.constant 0 : index
      %c0_13 = arith.constant 0 : index
      %13 = vector.load %arg5[%c0_12, %c0_13] : memref<1x128xf32, #tpu.memory_space<vmem>>, vector<1x128xf32>
      %14 = vector.broadcast %13 : vector<1x128xf32> to vector<1568x128xf32>
      %15 = arith.addf %12, %14 : vector<1568x128xf32>
      %cst_14 = arith.constant 0.000000e+00 : f32
      %16 = vector.broadcast %cst_14 : f32 to vector<1568x128xf32>
      %17 = arith.maximumf %15, %16 : vector<1568x128xf32>
      %18 = arith.truncf %17 : vector<1568x128xf32> to vector<1568x128xbf16>
      %c0_15 = arith.constant 0 : index
      %c0_16 = arith.constant 0 : index
      %19 = vector.load %arg6[%c0_15, %c0_16] : memref<1568x128xbf16, #tpu.memory_space<vmem>>, vector<1568x128xbf16>
      tpu.vector_store %arg6[%c0_15, %c0_16], %18 {strides = array<i32>} : memref<1568x128xbf16, #tpu.memory_space<vmem>>, vector<1568x128xbf16>,
    } else {
    }
    return
  }
  func.func @transform_0(%arg0: i32, %arg1: i32, %arg2: i32) -> (i32, i32) {
    %c0_i32 = arith.constant 0 : i32
    return %arg0, %arg2 : i32, i32
  }
  func.func @transform_1(%arg0: i32, %arg1: i32, %arg2: i32) -> (i32, i32) {
    %c0_i32 = arith.constant 0 : i32
    return %arg2, %arg1 : i32, i32
  }
  func.func @transform_2(%arg0: i32, %arg1: i32, %arg2: i32) -> (i32, i32) {
    %c0_i32 = arith.constant 0 : i32
    %c0_i32_0 = arith.constant 0 : i32
    return %c0_i32, %arg1 : i32, i32
  }
  func.func @transform_3(%arg0: i32, %arg1: i32, %arg2: i32) -> (i32, i32) {
    %c0_i32 = arith.constant 0 : i32
    return %arg0, %arg1 : i32, i32
  }
}

</mosaic_0001>

<bundles_post_ra>
// kernel: tpu_custom_call.1
= control target key start
LH: loop header
LB: loop body
LE: loop exit
PB: predicated region body
PF: predicated region fallthrough
CT: control target
= control target key end

     0   :  { %8 = vsyncpa [#allocation4], 0  ;;  %s5973_s0 = inlined_call_operand.hbm [shape: bf16[1568,128], index: 0, kind: input, shape index: {}]   ;;  %s5974_s1 = inlined_call_operand.hbm [shape: bf16[128,128], index: 1, kind: input, shape index: {}]   ;;  %s5975_s2 = inlined_call_operand.vmem [shape: f32[1,128], index: 2, kind: input, shape index: {}]   ;;  %s5976_s3 = inlined_call_operand.hbm [shape: bf16[1568,128], index: 3, kind: output, shape index: {}]  }
   0x1   :  { %9 = vsyncpa [#allocation7], 0 }
   0x2   :  { %10 = vsyncpa [#allocation5], 0  ;;  %s5697_s12 = smov [#allocation3]   ;;  %s5625_s16 = scalar_lea.hbm %s5973_s0, 12544 }
   0x3   :  { %s16_s13 = sshll.u32 %s5697_s12, 4  ;;  %p5626_p0 = scmp.ne.s32.totalorder %s5973_s0, %s5625_s16  ;;  %s17_s13 = int_to_ptr.vmem [resolvable:$true] %s16_s13 }
   0x4   :  { %p5629_p1 = scmp.lt.u32.totalorder %s5625_s16, %s5973_s0 }
   0x6   :  { %p5631_p2 = pnand %p5629_p1, %p5626_p0 }
   0x8   :  { %5634 = shalt.err (!%p5631_p2)
}
   0x9   :  { %s5635_s21 = scalar_lea.vmem %s17_s13, 12544  ;;  %p5640_p4 = scmp.lt.s32.totalorder %s17_s13, %s17_s13 }
   0xa   :  { %p5636_p3 = scmp.ne.s32.totalorder %s17_s13, %s5635_s21  ;;  %p5641_p5 = scmp.lt.s32.totalorder %s5635_s21, %s5635_s21 }
   0xc   :  { %p5642_p6 = por %p5641_p5, %p5640_p4 }
   0xe   :  { %p5643_p7 = pnand %p5642_p6, %p5636_p3 }
  0x10   :  { %5646 = shalt.err (!%p5643_p7)
}
  0x11   :  { %s5698_s22 = smov 64   ;;  %s5699_s23 = smov 4  }
  0x12   :  { %22 = dma.hbm_to_vmem [thread:$0]  %s5973_s0, 12544, %s17_s13, [#allocation4], %s5698_s22, %s5698_s22, %s5699_s23  }
  0x13   :  { %s5700_s26 = smov [#allocation6]   ;;  %s5647_s30 = scalar_lea.hbm %s5974_s1, 1024 }
  0x14   :  { %s28_s27 = sshll.u32 %s5700_s26, 4  ;;  %p5648_p8 = scmp.ne.s32.totalorder %s5974_s1, %s5647_s30  ;;  %s29_s27 = int_to_ptr.vmem [resolvable:$true] %s28_s27 }
  0x15   :  { %p5651_p9 = scmp.lt.u32.totalorder %s5647_s30, %s5974_s1 }
  0x17   :  { %p5653_p10 = pnand %p5651_p9, %p5648_p8 }
  0x19   :  { %5656 = shalt.err (!%p5653_p10)
}
  0x1a   :  { %s5657_s8 = scalar_lea.vmem %s29_s27, 1024  ;;  %p5662_p12 = scmp.lt.s32.totalorder %s29_s27, %s29_s27 }
  0x1b   :  { %p5658_p11 = scmp.ne.s32.totalorder %s29_s27, %s5657_s8  ;;  %p5663_p13 = scmp.lt.s32.totalorder %s5657_s8, %s5657_s8 }
  0x1d   :  { %p5664_p0 = por %p5663_p13, %p5662_p12 }
  0x1f   :  { %p5665_p1 = pnand %p5664_p0, %p5658_p11 }
  0x21   :  { %5668 = shalt.err (!%p5665_p1)
}
  0x22   :  { %34 = dma.hbm_to_vmem [thread:$0]  %s5974_s1, 1024, %s29_s27, [#allocation7], %s5698_s22, %s5698_s22, %s5699_s23  }
  0x23   :  { %5691 = dma.done.wait [#allocation4], 12544  }
  0x24   :  { %5692 = vsyncadd [#allocation4], 4294954752 }
  0x25   :  { %5693 = dma.done.wait [#allocation7], 1024  }
  0x26   :  { %5694 = vsyncadd [#allocation7], 4294966272  ;;  %v5518_v0 = vld [vmem:[#allocation6] sm:$0xff]   ;;  %v5519_v1 = vld [vmem:[#allocation6 + $0x8] sm:$0xff]  }
  0x27   :  { %5285 = vmatprep.subr.bf16.mxu0 %v5518_v0  ;;  %5497 = vmatprep.subr.bf16.mxu1 %v5518_v0  ;;  %v5520_v2 = vld [vmem:[#allocation6 + $0x10] sm:$0xff]   ;;  %v5521_v3 = vld [vmem:[#allocation6 + $0x18] sm:$0xff]   ;;  %v5528_v5 = vld [vmem:[#allocation3 + $0x190] sm:$0xff]  }
  0x28   :  { %5286 = vmatpush3.bf16.msra.mxu0 %v5518_v0  ;;  %5505 = vmatpush3.bf16.msra.mxu1 %v5518_v0  ;;  %v5526_v4 = vld [vmem:[#allocation3] sm:$0xff]   ;;  %v5522_v6 = vld [vmem:[#allocation6 + $0x20] sm:$0xff]   ;;  %v5523_v7 = vld [vmem:[#allocation6 + $0x28] sm:$0xff]  }
  0x29   :  { %5287 = vmatprep.subr.bf16.mxu0 %v5519_v1  ;;  %5498 = vmatprep.subr.bf16.mxu1 %v5519_v1  ;;  %v5524_v8 = vld [vmem:[#allocation6 + $0x30] sm:$0xff]   ;;  %v5525_v9 = vld [vmem:[#allocation6 + $0x38] sm:$0xff]   ;;  %v5529_v11 = vld [vmem:[#allocation3 + $0x198] sm:$0xff]  }
  0x2a   :  { %5301 = vmatprep.mubr.bf16.mxu0 %v5526_v4  ;;  %5401 = vmatprep.mubr.bf16.mxu1 %v5528_v5  ;;  %v5527_v10 = vld [vmem:[#allocation3 + $0x8] sm:$0xff]   ;;  %v5530_v12 = vld [vmem:[#allocation3 + $0x10] sm:$0xff]   ;;  %v5532_v13 = vld [vmem:[#allocation3 + $0x1a0] sm:$0xff]  }
  0x2b   :  { %v5531_v14 = vld [vmem:[#allocation3 + $0x18] sm:$0xff]   ;;  %v5533_v15 = vld [vmem:[#allocation3 + $0x1a8] sm:$0xff]   ;;  %v5534_v16 = vld [vmem:[#allocation3 + $0x20] sm:$0xff]  }
  0x2c   :  { %5288 = vmatpush3.bf16.msra.mxu0 %v5519_v1  ;;  %5506 = vmatpush3.bf16.msra.mxu1 %v5519_v1  ;;  %v5536_v17 = vld [vmem:[#allocation3 + $0x1b0] sm:$0xff]   ;;  %v5535_v18 = vld [vmem:[#allocation3 + $0x28] sm:$0xff]   ;;  %v5537_v19 = vld [vmem:[#allocation3 + $0x1b8] sm:$0xff]  }
  0x2d   :  { %5289 = vmatprep.subr.bf16.mxu0 %v5520_v2  ;;  %5499 = vmatprep.subr.bf16.mxu1 %v5520_v2  ;;  %v5538_v20 = vld [vmem:[#allocation3 + $0x30] sm:$0xff]   ;;  %v5540_v21 = vld [vmem:[#allocation3 + $0x1c0] sm:$0xff]   ;;  %v5539_v22 = vld [vmem:[#allocation3 + $0x38] sm:$0xff]  }
  0x2e   :  { %v5541_v23 = vld [vmem:[#allocation3 + $0x1c8] sm:$0xff]   ;;  %v5542_v24 = vld [vmem:[#allocation3 + $0x40] sm:$0xff]   ;;  %v5544_v25 = vld [vmem:[#allocation3 + $0x1d0] sm:$0xff]  }
  0x2f   :  { %v5543_v26 = vld [vmem:[#allocation3 + $0x48] sm:$0xff]   ;;  %v5545_v27 = vld [vmem:[#allocation3 + $0x1d8] sm:$0xff]   ;;  %v5546_v28 = vld [vmem:[#allocation3 + $0x50] sm:$0xff]  }
  0x30   :  { %5290 = vmatpush3.bf16.msra.mxu0 %v5520_v2  ;;  %5507 = vmatpush3.bf16.msra.mxu1 %v5520_v2  ;;  %v5548_v29 = vld [vmem:[#allocation3 + $0x1e0] sm:$0xff]   ;;  %v5547_v30 = vld [vmem:[#allocation3 + $0x58] sm:$0xff]   ;;  %v5549_v31 = vld [vmem:[#allocation3 + $0x1e8] sm:$0xff]  }
  0x31   :  { %5291 = vmatprep.subr.bf16.mxu0 %v5521_v3  ;;  %5500 = vmatprep.subr.bf16.mxu1 %v5521_v3  ;;  %v5550_v32 = vld [vmem:[#allocation3 + $0x60] sm:$0xff]   ;;  %v5552_v33 = vld [vmem:[#allocation3 + $0x1f0] sm:$0xff]   ;;  %v5551_v34 = vld [vmem:[#allocation3 + $0x68] sm:$0xff]  }
  0x32   :  { %v5553_v35 = vld [vmem:[#allocation3 + $0x1f8] sm:$0xff]   ;;  %v5554_v36 = vld [vmem:[#allocation3 + $0x70] sm:$0xff]   ;;  %v5556_v37 = vld [vmem:[#allocation3 + $0x200] sm:$0xff]  }
  0x33   :  { %v5555_v38 = vld [vmem:[#allocation3 + $0x78] sm:$0xff]   ;;  %v5557_v39 = vld [vmem:[#allocation3 + $0x208] sm:$0xff]   ;;  %v5558_v40 = vld [vmem:[#allocation3 + $0x80] sm:$0xff]  }
  0x34   :  { %5292 = vmatpush3.bf16.msra.mxu0 %v5521_v3  ;;  %5508 = vmatpush3.bf16.msra.mxu1 %v5521_v3  ;;  %v5560_v41 = vld [vmem:[#allocation3 + $0x210] sm:$0xff]   ;;  %v5559_v42 = vld [vmem:[#allocation3 + $0x88] sm:$0xff]   ;;  %v5561_v43 = vld [vmem:[#allocation3 + $0x218] sm:$0xff]  }
  0x35   :  { %5293 = vmatprep.subr.bf16.mxu0 %v5522_v6  ;;  %5501 = vmatprep.subr.bf16.mxu1 %v5522_v6  ;;  %v5562_v44 = vld [vmem:[#allocation3 + $0x90] sm:$0xff]   ;;  %v5564_v45 = vld [vmem:[#allocation3 + $0x220] sm:$0xff]   ;;  %v5563_v46 = vld [vmem:[#allocation3 + $0x98] sm:$0xff]  }
  0x36   :  { %v5565_v47 = vld [vmem:[#allocation3 + $0x228] sm:$0xff]   ;;  %v5566_v48 = vld [vmem:[#allocation3 + $0xa0] sm:$0xff]   ;;  %v5568_v49 = vld [vmem:[#allocation3 + $0x230] sm:$0xff]  }
  0x37   :  { %v5567_v50 = vld [vmem:[#allocation3 + $0xa8] sm:$0xff]   ;;  %v5569_v51 = vld [vmem:[#allocation3 + $0x238] sm:$0xff]   ;;  %v5570_v52 = vld [vmem:[#allocation3 + $0xb0] sm:$0xff]  }
  0x38   :  { %5294 = vmatpush3.bf16.msra.mxu0 %v5522_v6  ;;  %5509 = vmatpush3.bf16.msra.mxu1 %v5522_v6  ;;  %v5572_v53 = vld [vmem:[#allocation3 + $0x240] sm:$0xff]   ;;  %v5571_v54 = vld [vmem:[#allocation3 + $0xb8] sm:$0xff]   ;;  %v5573_v55 = vld [vmem:[#allocation3 + $0x248] sm:$0xff]  }
  0x39   :  { %5295 = vmatprep.subr.bf16.mxu0 %v5523_v7  ;;  %5502 = vmatprep.subr.bf16.mxu1 %v5523_v7  ;;  %v5574_v56 = vld [vmem:[#allocation3 + $0xc0] sm:$0xff]   ;;  %v5576_v57 = vld [vmem:[#allocation3 + $0x250] sm:$0xff]   ;;  %v5575_v58 = vld [vmem:[#allocation3 + $0xc8] sm:$0xff]  }
  0x3a   :  { %v5577_v59 = vld [vmem:[#allocation3 + $0x258] sm:$0xff]   ;;  %v5578_v60 = vld [vmem:[#allocation3 + $0xd0] sm:$0xff]   ;;  %v5580_v61 = vld [vmem:[#allocation3 + $0x260] sm:$0xff]  }
  0x3b   :  { %v5579_v62 = vld [vmem:[#allocation3 + $0xd8] sm:$0xff]   ;;  %v5581_v63 = vld [vmem:[#allocation3 + $0x268] sm:$0xff]   ;;  %v5582_v0 = vld [vmem:[#allocation3 + $0xe0] sm:$0xff]  }
  0x3c   :  { %5296 = vmatpush3.bf16.msra.mxu0 %v5523_v7  ;;  %5510 = vmatpush3.bf16.msra.mxu1 %v5523_v7  ;;  %v5584_v1 = vld [vmem:[#allocation3 + $0x270] sm:$0xff]   ;;  %v5583_v2 = vld [vmem:[#allocation3 + $0xe8] sm:$0xff]   ;;  %v5585_v3 = vld [vmem:[#allocation3 + $0x278] sm:$0xff]  }
  0x3d   :  { %5297 = vmatprep.subr.bf16.mxu0 %v5524_v8  ;;  %5503 = vmatprep.subr.bf16.mxu1 %v5524_v8  ;;  %v5586_v4 = vld [vmem:[#allocation3 + $0xf0] sm:$0xff]   ;;  %v5588_v5 = vld [vmem:[#allocation3 + $0x280] sm:$0xff]   ;;  %v5587_v6 = vld [vmem:[#allocation3 + $0xf8] sm:$0xff]  }
  0x3e   :  { %v5589_v7 = vld [vmem:[#allocation3 + $0x288] sm:$0xff]  }
  0x40   :  { %5298 = vmatpush3.bf16.msra.mxu0 %v5524_v8  ;;  %5511 = vmatpush3.bf16.msra.mxu1 %v5524_v8  ;;  %v5590_v8 = vld [vmem:[#allocation3 + $0x100] sm:$0xff]  }
  0x41   :  { %5299 = vmatprep.subr.bf16.mxu0 %v5525_v9  ;;  %5504 = vmatprep.subr.bf16.mxu1 %v5525_v9 }
  0x44   :  { %5300 = vmatpush3.bf16.msra.mxu0 %v5525_v9  ;;  %5512 = vmatpush3.bf16.msra.mxu1 %v5525_v9  ;;  %v5592_v9 = vld [vmem:[#allocation3 + $0x290] sm:$0xff]  }
  0x47   :  { %5302 = vmatmul.mubr.bf16.vlgmr.msra.gmra.mrb[0].mxu0 %v5527_v10  ;;  %5402 = vmatmul.mubr.bf16.vlgmr.msra.gmra.mrb[0].mxu1 %v5529_v11  ;;  %v5591_v10 = vld [vmem:[#allocation3 + $0x108] sm:$0xff]   ;;  %v5593_v11 = vld [vmem:[#allocation3 + $0x298] sm:$0xff]  }
  0x48   :  { %5305 = vmatprep.mubr.bf16.mxu0 %v5530_v12  ;;  %5405 = vmatprep.mubr.bf16.mxu1 %v5532_v13  ;;  %v5594_v12 = vld [vmem:[#allocation3 + $0x110] sm:$0xff]   ;;  %v5596_v13 = vld [vmem:[#allocation3 + $0x2a0] sm:$0xff]  }
  0x4f   :  { %5306 = vmatmul.mubr.bf16.gmra.mrb[4].mxu0 %v5531_v14  ;;  %5406 = vmatmul.mubr.bf16.gmra.mrb[4].mxu1 %v5533_v15  ;;  %v5595_v14 = vld [vmem:[#allocation3 + $0x118] sm:$0xff]   ;;  %v5597_v15 = vld [vmem:[#allocation3 + $0x2a8] sm:$0xff]  }
  0x50   :  { %5309 = vmatprep.mubr.bf16.mxu0 %v5534_v16  ;;  %5409 = vmatprep.mubr.bf16.mxu1 %v5536_v17  ;;  %v5598_v16 = vld [vmem:[#allocation3 + $0x120] sm:$0xff]   ;;  %v5600_v17 = vld [vmem:[#allocation3 + $0x2b0] sm:$0xff]  }
  0x57   :  { %5310 = vmatmul.mubr.bf16.gmra.mrb[8].mxu0 %v5535_v18  ;;  %5410 = vmatmul.mubr.bf16.gmra.mrb[8].mxu1 %v5537_v19  ;;  %v5599_v18 = vld [vmem:[#allocation3 + $0x128] sm:$0xff]   ;;  %v5601_v19 = vld [vmem:[#allocation3 + $0x2b8] sm:$0xff]  }
  0x58   :  { %5313 = vmatprep.mubr.bf16.mxu0 %v5538_v20  ;;  %5413 = vmatprep.mubr.bf16.mxu1 %v5540_v21  ;;  %v5602_v20 = vld [vmem:[#allocation3 + $0x130] sm:$0xff]   ;;  %v5604_v21 = vld [vmem:[#allocation3 + $0x2c0] sm:$0xff]  }
  0x5f   :  { %5314 = vmatmul.mubr.bf16.gmra.mrb[12].mxu0 %v5539_v22  ;;  %5414 = vmatmul.mubr.bf16.gmra.mrb[12].mxu1 %v5541_v23  ;;  %v5603_v22 = vld [vmem:[#allocation3 + $0x138] sm:$0xff]   ;;  %v5605_v23 = vld [vmem:[#allocation3 + $0x2c8] sm:$0xff]  }
  0x60   :  { %5317 = vmatprep.mubr.bf16.mxu0 %v5542_v24  ;;  %5417 = vmatprep.mubr.bf16.mxu1 %v5544_v25  ;;  %v5606_v24 = vld [vmem:[#allocation3 + $0x140] sm:$0xff]   ;;  %v5608_v25 = vld [vmem:[#allocation3 + $0x2d0] sm:$0xff]  }
  0x67   :  { %5318 = vmatmul.mubr.bf16.gmra.mrb[16].mxu0 %v5543_v26  ;;  %5418 = vmatmul.mubr.bf16.gmra.mrb[16].mxu1 %v5545_v27  ;;  %v5607_v26 = vld [vmem:[#allocation3 + $0x148] sm:$0xff]   ;;  %v5609_v27 = vld [vmem:[#allocation3 + $0x2d8] sm:$0xff]  }
  0x68   :  { %5321 = vmatprep.mubr.bf16.mxu0 %v5546_v28  ;;  %5421 = vmatprep.mubr.bf16.mxu1 %v5548_v29  ;;  %v5610_v28 = vld [vmem:[#allocation3 + $0x150] sm:$0xff]   ;;  %v5612_v29 = vld [vmem:[#allocation3 + $0x2e0] sm:$0xff]  }
  0x6f   :  { %5322 = vmatmul.mubr.bf16.gmra.mrb[20].mxu0 %v5547_v30  ;;  %5422 = vmatmul.mubr.bf16.gmra.mrb[20].mxu1 %v5549_v31  ;;  %v5611_v30 = vld [vmem:[#allocation3 + $0x158] sm:$0xff]   ;;  %v5613_v31 = vld [vmem:[#allocation3 + $0x2e8] sm:$0xff]  }
  0x70   :  { %5325 = vmatprep.mubr.bf16.mxu0 %v5550_v32  ;;  %5425 = vmatprep.mubr.bf16.mxu1 %v5552_v33  ;;  %v5614_v32 = vld [vmem:[#allocation3 + $0x160] sm:$0xff]   ;;  %v5616_v33 = vld [vmem:[#allocation3 + $0x2f0] sm:$0xff]  }
  0x77   :  { %5326 = vmatmul.mubr.bf16.gmra.mrb[24].mxu0 %v5551_v34  ;;  %5426 = vmatmul.mubr.bf16.gmra.mrb[24].mxu1 %v5553_v35  ;;  %v5615_v34 = vld [vmem:[#allocation3 + $0x168] sm:$0xff]   ;;  %v5617_v35 = vld [vmem:[#allocation3 + $0x2f8] sm:$0xff]  }
  0x78   :  { %5329 = vmatprep.mubr.bf16.mxu0 %v5554_v36  ;;  %5429 = vmatprep.mubr.bf16.mxu1 %v5556_v37  ;;  %v5618_v36 = vld [vmem:[#allocation3 + $0x170] sm:$0xff]   ;;  %v5620_v37 = vld [vmem:[#allocation3 + $0x300] sm:$0xff]  }
  0x7f   :  { %5330 = vmatmul.mubr.bf16.gmra.mrb[28].mxu0 %v5555_v38  ;;  %5430 = vmatmul.mubr.bf16.gmra.mrb[28].mxu1 %v5557_v39  ;;  %v5619_v38 = vld [vmem:[#allocation3 + $0x178] sm:$0xff]   ;;  %v5621_v39 = vld [vmem:[#allocation3 + $0x308] sm:$0xff]  }
  0x80   :  { %5333 = vmatprep.mubr.bf16.mxu0 %v5558_v40  ;;  %5433 = vmatprep.mubr.bf16.mxu1 %v5560_v41  ;;  %v5622_v40 = vld [vmem:[#allocation3 + $0x180] sm:$0xff]   ;;  %v5623_v41 = vld [vmem:[#allocation3 + $0x188] sm:$0xff]  }
  0x87   :  { %5334 = vmatmul.mubr.bf16.gmra.mrb[32].mxu0 %v5559_v42  ;;  %5434 = vmatmul.mubr.bf16.gmra.mrb[32].mxu1 %v5561_v43  ;;  %v5755_v42 = vld [vmem:[%s5975_s2] ss:$0 sm:$0xff] }
  0x88   :  { %5337 = vmatprep.mubr.bf16.mxu0 %v5562_v44  ;;  %5437 = vmatprep.mubr.bf16.mxu1 %v5564_v45 }
  0x8f   :  { %5338 = vmatmul.mubr.bf16.gmra.mrb[36].mxu0 %v5563_v46  ;;  %5438 = vmatmul.mubr.bf16.gmra.mrb[36].mxu1 %v5565_v47 }
  0x90   :  { %5341 = vmatprep.mubr.bf16.mxu0 %v5566_v48  ;;  %5441 = vmatprep.mubr.bf16.mxu1 %v5568_v49 }
  0x97   :  { %5342 = vmatmul.mubr.bf16.gmra.mrb[40].mxu0 %v5567_v50  ;;  %5442 = vmatmul.mubr.bf16.gmra.mrb[40].mxu1 %v5569_v51 }
  0x98   :  { %5345 = vmatprep.mubr.bf16.mxu0 %v5570_v52  ;;  %5445 = vmatprep.mubr.bf16.mxu1 %v5572_v53 }
  0x9f   :  { %5346 = vmatmul.mubr.bf16.gmra.mrb[44].mxu0 %v5571_v54  ;;  %5446 = vmatmul.mubr.bf16.gmra.mrb[44].mxu1 %v5573_v55 }
  0xa0   :  { %5349 = vmatprep.mubr.bf16.mxu0 %v5574_v56  ;;  %5449 = vmatprep.mubr.bf16.mxu1 %v5576_v57 }
  0xa7   :  { %5350 = vmatmul.mubr.bf16.gmra.mrb[48].mxu0 %v5575_v58  ;;  %5450 = vmatmul.mubr.bf16.gmra.mrb[48].mxu1 %v5577_v59 }
  0xa8   :  { %5353 = vmatprep.mubr.bf16.mxu0 %v5578_v60  ;;  %5453 = vmatprep.mubr.bf16.mxu1 %v5580_v61 }
  0xaf   :  { %5354 = vmatmul.mubr.bf16.gmra.mrb[52].mxu0 %v5579_v62  ;;  %5454 = vmatmul.mubr.bf16.gmra.mrb[52].mxu1 %v5581_v63 }
  0xb0   :  { %5357 = vmatprep.mubr.bf16.mxu0 %v5582_v0  ;;  %5457 = vmatprep.mubr.bf16.mxu1 %v5584_v1 }
  0xb7   :  { %5358 = vmatmul.mubr.bf16.gmra.mrb[56].mxu0 %v5583_v2  ;;  %5458 = vmatmul.mubr.bf16.gmra.mrb[56].mxu1 %v5585_v3 }
  0xb8   :  { %5361 = vmatprep.mubr.bf16.mxu0 %v5586_v4  ;;  %5461 = vmatprep.mubr.bf16.mxu1 %v5588_v5 }
  0xbf   :  { %5362 = vmatmul.mubr.bf16.gmra.mrb[60].mxu0 %v5587_v6  ;;  %5462 = vmatmul.mubr.bf16.gmra.mrb[60].mxu1 %v5589_v7 }
  0xc0   :  { %5365 = vmatprep.mubr.bf16.mxu0 %v5590_v8  ;;  %5465 = vmatprep.mubr.bf16.mxu1 %v5592_v9 }
  0xc7   :  { %5366 = vmatmul.mubr.bf16.gmra.mrb[64].mxu0 %v5591_v10  ;;  %5466 = vmatmul.mubr.bf16.gmra.mrb[64].mxu1 %v5593_v11 }
  0xc8   :  { %5369 = vmatprep.mubr.bf16.mxu0 %v5594_v12  ;;  %5469 = vmatprep.mubr.bf16.mxu1 %v5596_v13 }
  0xcf   :  { %5370 = vmatmul.mubr.bf16.gmra.mrb[68].mxu0 %v5595_v14  ;;  %5470 = vmatmul.mubr.bf16.gmra.mrb[68].mxu1 %v5597_v15 }
  0xd0   :  { %5373 = vmatprep.mubr.bf16.mxu0 %v5598_v16  ;;  %5473 = vmatprep.mubr.bf16.mxu1 %v5600_v17 }
  0xd7   :  { %5374 = vmatmul.mubr.bf16.gmra.mrb[72].mxu0 %v5599_v18  ;;  %5474 = vmatmul.mubr.bf16.gmra.mrb[72].mxu1 %v5601_v19 }
  0xd8   :  { %5377 = vmatprep.mubr.bf16.mxu0 %v5602_v20  ;;  %5477 = vmatprep.mubr.bf16.mxu1 %v5604_v21 }
  0xdf   :  { %5378 = vmatmul.mubr.bf16.gmra.mrb[76].mxu0 %v5603_v22  ;;  %5478 = vmatmul.mubr.bf16.gmra.mrb[76].mxu1 %v5605_v23 }
  0xe0   :  { %5381 = vmatprep.mubr.bf16.mxu0 %v5606_v24  ;;  %5481 = vmatprep.mubr.bf16.mxu1 %v5608_v25 }
  0xe7   :  { %5382 = vmatmul.mubr.bf16.gmra.mrb[80].mxu0 %v5607_v26  ;;  %5482 = vmatmul.mubr.bf16.gmra.mrb[80].mxu1 %v5609_v27 }
  0xe8   :  { %5385 = vmatprep.mubr.bf16.mxu0 %v5610_v28  ;;  %5485 = vmatprep.mubr.bf16.mxu1 %v5612_v29 }
  0xef   :  { %5386 = vmatmul.mubr.bf16.gmra.mrb[84].mxu0 %v5611_v30  ;;  %5486 = vmatmul.mubr.bf16.gmra.mrb[84].mxu1 %v5613_v31 }
  0xf0   :  { %5389 = vmatprep.mubr.bf16.mxu0 %v5614_v32  ;;  %5489 = vmatprep.mubr.bf16.mxu1 %v5616_v33 }
  0xf7   :  { %5390 = vmatmul.mubr.bf16.gmra.mrb[88].mxu0 %v5615_v34  ;;  %5490 = vmatmul.mubr.bf16.gmra.mrb[88].mxu1 %v5617_v35 }
  0xf8   :  { %5393 = vmatprep.mubr.bf16.mxu0 %v5618_v36  ;;  %5493 = vmatprep.mubr.bf16.mxu1 %v5620_v37 }
  0xff   :  { %5394 = vmatmul.mubr.bf16.gmra.mrb[92].mxu0 %v5619_v38  ;;  %5494 = vmatmul.mubr.bf16.gmra.mrb[92].mxu1 %v5621_v39 }
 0x100   :  { %5397 = vmatprep.mubr.bf16.mxu0 %v5622_v40 }
 0x107   :  { %5398 = vmatmul.mubr.bf16.gmra.mrb[96].mxu0 %v5623_v41 }
 0x11a   :  { %v5303_v43 = vpop.f32.mrb[0].mxu0  ;;  %v5403_v44 = vpop.f32.mrb[0].mxu1 }
 0x11b   :  { %v2705_v45 = vadd.f32 %v5303_v43, %v5755_v42  ;;  %v1322_v46 = vpop.f32.mrb[1].mxu0  ;;  %v2805_v47 = vadd.f32 %v5403_v44, %v5755_v42  ;;  %v1722_v48 = vpop.f32.mrb[1].mxu1 }
 0x11c   :  { %v2703_v49 = vadd.f32 %v5755_v42, %v1322_v46  ;;  %v5304_v50 = vpop.f32.mrb[2].mxu0  ;;  %v2803_v51 = vadd.f32 %v5755_v42, %v1722_v48  ;;  %v5404_v52 = vpop.f32.mrb[2].mxu1 }
 0x11d   :  { %v2706_v53 = vadd.f32 %v5304_v50, %v5755_v42  ;;  %v1325_v54 = vpop.f32.mrb[3].mxu0  ;;  %v3001_v55 = vmax.f32 %v2805_v47, 0.0  ;;  %v2806_v56 = vadd.f32 %v5404_v52, %v5755_v42  ;;  %v1725_v57 = vpop.f32.mrb[3].mxu1  ;;  %v2901_v61 = vmax.f32 %v2705_v45, 0.0 }
 0x11e   :  { %v2704_v58 = vadd.f32 %v5755_v42, %v1325_v54  ;;  %v2999_v59 = vmax.f32 %v2803_v51, 0.0  ;;  %v2804_v60 = vadd.f32 %v5755_v42, %v1725_v57  ;;  %v2899_v0 = vmax.f32 %v2703_v49, 0.0 }
 0x11f   :  { %v2902_v62 = vmax.f32 %v2706_v53, 0.0  ;;  %v3002_v63 = vmax.f32 %v2806_v56, 0.0 }
 0x120   :  { %v2900_v1 = vmax.f32 %v2704_v58, 0.0  ;;  %v3000_v2 = vmax.f32 %v2804_v60, 0.0 }
 0x121   :  { %v4600_v3 = vpack.c.bf16 %v2902_v62, %v2901_v61  ;;  %v4850_v4 = vpack.c.bf16 %v3002_v63, %v3001_v55 }
 0x122   :  { %v4595_v5 = vpack.c.bf16 %v2900_v1, %v2899_v0  ;;  %v5307_v6 = vpop.f32.mrb[4].mxu0  ;;  %v4845_v7 = vpack.c.bf16 %v3000_v2, %v2999_v59  ;;  %v5407_v8 = vpop.f32.mrb[4].mxu1 }
 0x123   :  { %5082 = vst [vmem:[#allocation8 + $0x8] sm:$0xff] %v4600_v3   ;;  %5132 = vst [vmem:[#allocation8 + $0x198] sm:$0xff] %v4850_v4   ;;  %v2709_v9 = vadd.f32 %v5307_v6, %v5755_v42  ;;  %v1338_v10 = vpop.f32.mrb[5].mxu0  ;;  %v2809_v11 = vadd.f32 %v5407_v8, %v5755_v42  ;;  %v1738_v12 = vpop.f32.mrb[5].mxu1 }
 0x124   :  { %4596 = vst [vmem:[#allocation8] sm:$0xff] %v4595_v5   ;;  %5131 = vst [vmem:[#allocation8 + $0x190] sm:$0xff] %v4845_v7   ;;  %v2707_v13 = vadd.f32 %v5755_v42, %v1338_v10  ;;  %v5308_v14 = vpop.f32.mrb[6].mxu0  ;;  %v2807_v15 = vadd.f32 %v5755_v42, %v1738_v12  ;;  %v5408_v16 = vpop.f32.mrb[6].mxu1 }
 0x125   :  { %v2710_v17 = vadd.f32 %v5308_v14, %v5755_v42  ;;  %v1341_v18 = vpop.f32.mrb[7].mxu0  ;;  %v3005_v19 = vmax.f32 %v2809_v11, 0.0  ;;  %v2810_v20 = vadd.f32 %v5408_v16, %v5755_v42  ;;  %v1741_v21 = vpop.f32.mrb[7].mxu1  ;;  %v2905_v25 = vmax.f32 %v2709_v9, 0.0 }
 0x126   :  { %v2708_v22 = vadd.f32 %v5755_v42, %v1341_v18  ;;  %v3003_v23 = vmax.f32 %v2807_v15, 0.0  ;;  %v2808_v24 = vadd.f32 %v5755_v42, %v1741_v21  ;;  %v2903_v28 = vmax.f32 %v2707_v13, 0.0 }
 0x127   :  { %v2906_v26 = vmax.f32 %v2710_v17, 0.0  ;;  %v3006_v27 = vmax.f32 %v2810_v20, 0.0 }
 0x128   :  { %v2904_v29 = vmax.f32 %v2708_v22, 0.0  ;;  %v3004_v30 = vmax.f32 %v2808_v24, 0.0 }
 0x129   :  { %v4610_v31 = vpack.c.bf16 %v2906_v26, %v2905_v25  ;;  %v4860_v32 = vpack.c.bf16 %v3006_v27, %v3005_v19 }
 0x12a   :  { %v4605_v33 = vpack.c.bf16 %v2904_v29, %v2903_v28  ;;  %v5311_v34 = vpop.f32.mrb[8].mxu0  ;;  %v4855_v35 = vpack.c.bf16 %v3004_v30, %v3003_v23  ;;  %v5411_v36 = vpop.f32.mrb[8].mxu1 }
 0x12b   :  { %5084 = vst [vmem:[#allocation8 + $0x18] sm:$0xff] %v4610_v31   ;;  %5134 = vst [vmem:[#allocation8 + $0x1a8] sm:$0xff] %v4860_v32   ;;  %v2713_v37 = vadd.f32 %v5311_v34, %v5755_v42  ;;  %v1354_v38 = vpop.f32.mrb[9].mxu0  ;;  %v2813_v39 = vadd.f32 %v5411_v36, %v5755_v42  ;;  %v1754_v40 = vpop.f32.mrb[9].mxu1 }
 0x12c   :  { %5083 = vst [vmem:[#allocation8 + $0x10] sm:$0xff] %v4605_v33   ;;  %5133 = vst [vmem:[#allocation8 + $0x1a0] sm:$0xff] %v4855_v35   ;;  %v2711_v41 = vadd.f32 %v5755_v42, %v1354_v38  ;;  %v5312_v43 = vpop.f32.mrb[10].mxu0  ;;  %v2811_v44 = vadd.f32 %v5755_v42, %v1754_v40  ;;  %v5412_v45 = vpop.f32.mrb[10].mxu1 }
 0x12d   :  { %v2714_v46 = vadd.f32 %v5312_v43, %v5755_v42  ;;  %v1357_v47 = vpop.f32.mrb[11].mxu0  ;;  %v3009_v48 = vmax.f32 %v2813_v39, 0.0  ;;  %v2814_v49 = vadd.f32 %v5412_v45, %v5755_v42  ;;  %v1757_v50 = vpop.f32.mrb[11].mxu1  ;;  %v2909_v54 = vmax.f32 %v2713_v37, 0.0 }
 0x12e   :  { %v2712_v51 = vadd.f32 %v5755_v42, %v1357_v47  ;;  %v3007_v52 = vmax.f32 %v2811_v44, 0.0  ;;  %v2812_v53 = vadd.f32 %v5755_v42, %v1757_v50  ;;  %v2907_v57 = vmax.f32 %v2711_v41, 0.0 }
 0x12f   :  { %v2910_v55 = vmax.f32 %v2714_v46, 0.0  ;;  %v3010_v56 = vmax.f32 %v2814_v49, 0.0 }
 0x130   :  { %v2908_v58 = vmax.f32 %v2712_v51, 0.0  ;;  %v3008_v59 = vmax.f32 %v2812_v53, 0.0 }
 0x131   :  { %v4620_v60 = vpack.c.bf16 %v2910_v55, %v2909_v54  ;;  %v4870_v61 = vpack.c.bf16 %v3010_v56, %v3009_v48 }
 0x132   :  { %v4615_v62 = vpack.c.bf16 %v2908_v58, %v2907_v57  ;;  %v5315_v63 = vpop.f32.mrb[12].mxu0  ;;  %v4865_v0 = vpack.c.bf16 %v3008_v59, %v3007_v52  ;;  %v5415_v1 = vpop.f32.mrb[12].mxu1 }
 0x133   :  { %5086 = vst [vmem:[#allocation8 + $0x28] sm:$0xff] %v4620_v60   ;;  %5136 = vst [vmem:[#allocation8 + $0x1b8] sm:$0xff] %v4870_v61   ;;  %v2717_v2 = vadd.f32 %v5315_v63, %v5755_v42  ;;  %v1370_v3 = vpop.f32.mrb[13].mxu0  ;;  %v2817_v4 = vadd.f32 %v5415_v1, %v5755_v42  ;;  %v1770_v5 = vpop.f32.mrb[13].mxu1 }
 0x134   :  { %5085 = vst [vmem:[#allocation8 + $0x20] sm:$0xff] %v4615_v62   ;;  %5135 = vst [vmem:[#allocation8 + $0x1b0] sm:$0xff] %v4865_v0   ;;  %v2715_v6 = vadd.f32 %v5755_v42, %v1370_v3  ;;  %v5316_v7 = vpop.f32.mrb[14].mxu0  ;;  %v2815_v8 = vadd.f32 %v5755_v42, %v1770_v5  ;;  %v5416_v9 = vpop.f32.mrb[14].mxu1 }
 0x135   :  { %v2718_v10 = vadd.f32 %v5316_v7, %v5755_v42  ;;  %v1373_v11 = vpop.f32.mrb[15].mxu0  ;;  %v3013_v12 = vmax.f32 %v2817_v4, 0.0  ;;  %v2818_v13 = vadd.f32 %v5416_v9, %v5755_v42  ;;  %v1773_v14 = vpop.f32.mrb[15].mxu1  ;;  %v2913_v18 = vmax.f32 %v2717_v2, 0.0 }
 0x136   :  { %v2716_v15 = vadd.f32 %v5755_v42, %v1373_v11  ;;  %v3011_v16 = vmax.f32 %v2815_v8, 0.0  ;;  %v2816_v17 = vadd.f32 %v5755_v42, %v1773_v14  ;;  %v2911_v21 = vmax.f32 %v2715_v6, 0.0 }
 0x137   :  { %v2914_v19 = vmax.f32 %v2718_v10, 0.0  ;;  %v3014_v20 = vmax.f32 %v2818_v13, 0.0 }
 0x138   :  { %v2912_v22 = vmax.f32 %v2716_v15, 0.0  ;;  %v3012_v23 = vmax.f32 %v2816_v17, 0.0 }
 0x139   :  { %v4630_v24 = vpack.c.bf16 %v2914_v19, %v2913_v18  ;;  %v4880_v25 = vpack.c.bf16 %v3014_v20, %v3013_v12 }
 0x13a   :  { %v4625_v26 = vpack.c.bf16 %v2912_v22, %v2911_v21  ;;  %v5319_v27 = vpop.f32.mrb[16].mxu0  ;;  %v4875_v28 = vpack.c.bf16 %v3012_v23, %v3011_v16  ;;  %v5419_v29 = vpop.f32.mrb[16].mxu1 }
 0x13b   :  { %5088 = vst [vmem:[#allocation8 + $0x38] sm:$0xff] %v4630_v24   ;;  %5138 = vst [vmem:[#allocation8 + $0x1c8] sm:$0xff] %v4880_v25   ;;  %v2721_v30 = vadd.f32 %v5319_v27, %v5755_v42  ;;  %v1386_v31 = vpop.f32.mrb[17].mxu0  ;;  %v2821_v32 = vadd.f32 %v5419_v29, %v5755_v42  ;;  %v1786_v33 = vpop.f32.mrb[17].mxu1 }
 0x13c   :  { %5087 = vst [vmem:[#allocation8 + $0x30] sm:$0xff] %v4625_v26   ;;  %5137 = vst [vmem:[#allocation8 + $0x1c0] sm:$0xff] %v4875_v28   ;;  %v2719_v34 = vadd.f32 %v5755_v42, %v1386_v31  ;;  %v5320_v35 = vpop.f32.mrb[18].mxu0  ;;  %v2819_v36 = vadd.f32 %v5755_v42, %v1786_v33  ;;  %v5420_v37 = vpop.f32.mrb[18].mxu1 }
 0x13d   :  { %v2722_v38 = vadd.f32 %v5320_v35, %v5755_v42  ;;  %v1389_v39 = vpop.f32.mrb[19].mxu0  ;;  %v3017_v40 = vmax.f32 %v2821_v32, 0.0  ;;  %v2822_v41 = vadd.f32 %v5420_v37, %v5755_v42  ;;  %v1789_v43 = vpop.f32.mrb[19].mxu1  ;;  %v2917_v47 = vmax.f32 %v2721_v30, 0.0 }
 0x13e   :  { %v2720_v44 = vadd.f32 %v5755_v42, %v1389_v39  ;;  %v3015_v45 = vmax.f32 %v2819_v36, 0.0  ;;  %v2820_v46 = vadd.f32 %v5755_v42, %v1789_v43  ;;  %v2915_v50 = vmax.f32 %v2719_v34, 0.0 }
 0x13f   :  { %v2918_v48 = vmax.f32 %v2722_v38, 0.0  ;;  %v3018_v49 = vmax.f32 %v2822_v41, 0.0 }
 0x140   :  { %v2916_v51 = vmax.f32 %v2720_v44, 0.0  ;;  %v3016_v52 = vmax.f32 %v2820_v46, 0.0 }
 0x141   :  { %v4640_v53 = vpack.c.bf16 %v2918_v48, %v2917_v47  ;;  %v4890_v54 = vpack.c.bf16 %v3018_v49, %v3017_v40 }
 0x142   :  { %v4635_v55 = vpack.c.bf16 %v2916_v51, %v2915_v50  ;;  %v5323_v56 = vpop.f32.mrb[20].mxu0  ;;  %v4885_v57 = vpack.c.bf16 %v3016_v52, %v3015_v45  ;;  %v5423_v58 = vpop.f32.mrb[20].mxu1 }
 0x143   :  { %5090 = vst [vmem:[#allocation8 + $0x48] sm:$0xff] %v4640_v53   ;;  %5140 = vst [vmem:[#allocation8 + $0x1d8] sm:$0xff] %v4890_v54   ;;  %v2725_v59 = vadd.f32 %v5323_v56, %v5755_v42  ;;  %v1402_v60 = vpop.f32.mrb[21].mxu0  ;;  %v2825_v61 = vadd.f32 %v5423_v58, %v5755_v42  ;;  %v1802_v62 = vpop.f32.mrb[21].mxu1 }
 0x144   :  { %5089 = vst [vmem:[#allocation8 + $0x40] sm:$0xff] %v4635_v55   ;;  %5139 = vst [vmem:[#allocation8 + $0x1d0] sm:$0xff] %v4885_v57   ;;  %v2723_v63 = vadd.f32 %v5755_v42, %v1402_v60  ;;  %v5324_v0 = vpop.f32.mrb[22].mxu0  ;;  %v2823_v1 = vadd.f32 %v5755_v42, %v1802_v62  ;;  %v5424_v2 = vpop.f32.mrb[22].mxu1 }
 0x145   :  { %v2726_v3 = vadd.f32 %v5324_v0, %v5755_v42  ;;  %v1405_v4 = vpop.f32.mrb[23].mxu0  ;;  %v3021_v5 = vmax.f32 %v2825_v61, 0.0  ;;  %v2826_v6 = vadd.f32 %v5424_v2, %v5755_v42  ;;  %v1805_v7 = vpop.f32.mrb[23].mxu1  ;;  %v2921_v11 = vmax.f32 %v2725_v59, 0.0 }
 0x146   :  { %v2724_v8 = vadd.f32 %v5755_v42, %v1405_v4  ;;  %v3019_v9 = vmax.f32 %v2823_v1, 0.0  ;;  %v2824_v10 = vadd.f32 %v5755_v42, %v1805_v7  ;;  %v2919_v14 = vmax.f32 %v2723_v63, 0.0 }
 0x147   :  { %v2922_v12 = vmax.f32 %v2726_v3, 0.0  ;;  %v3022_v13 = vmax.f32 %v2826_v6, 0.0 }
 0x148   :  { %v2920_v15 = vmax.f32 %v2724_v8, 0.0  ;;  %v3020_v16 = vmax.f32 %v2824_v10, 0.0 }
 0x149   :  { %v4650_v17 = vpack.c.bf16 %v2922_v12, %v2921_v11  ;;  %v4900_v18 = vpack.c.bf16 %v3022_v13, %v3021_v5 }
 0x14a   :  { %v4645_v19 = vpack.c.bf16 %v2920_v15, %v2919_v14  ;;  %v5327_v20 = vpop.f32.mrb[24].mxu0  ;;  %v4895_v21 = vpack.c.bf16 %v3020_v16, %v3019_v9  ;;  %v5427_v22 = vpop.f32.mrb[24].mxu1 }
 0x14b   :  { %5092 = vst [vmem:[#allocation8 + $0x58] sm:$0xff] %v4650_v17   ;;  %5142 = vst [vmem:[#allocation8 + $0x1e8] sm:$0xff] %v4900_v18   ;;  %v2729_v23 = vadd.f32 %v5327_v20, %v5755_v42  ;;  %v1418_v24 = vpop.f32.mrb[25].mxu0  ;;  %v2829_v25 = vadd.f32 %v5427_v22, %v5755_v42  ;;  %v1818_v26 = vpop.f32.mrb[25].mxu1 }
 0x14c   :  { %5091 = vst [vmem:[#allocation8 + $0x50] sm:$0xff] %v4645_v19   ;;  %5141 = vst [vmem:[#allocation8 + $0x1e0] sm:$0xff] %v4895_v21   ;;  %v2727_v27 = vadd.f32 %v5755_v42, %v1418_v24  ;;  %v5328_v28 = vpop.f32.mrb[26].mxu0  ;;  %v2827_v29 = vadd.f32 %v5755_v42, %v1818_v26  ;;  %v5428_v30 = vpop.f32.mrb[26].mxu1 }
 0x14d   :  { %v2730_v31 = vadd.f32 %v5328_v28, %v5755_v42  ;;  %v1421_v32 = vpop.f32.mrb[27].mxu0  ;;  %v3025_v33 = vmax.f32 %v2829_v25, 0.0  ;;  %v2830_v34 = vadd.f32 %v5428_v30, %v5755_v42  ;;  %v1821_v35 = vpop.f32.mrb[27].mxu1  ;;  %v2925_v39 = vmax.f32 %v2729_v23, 0.0 }
 0x14e   :  { %v2728_v36 = vadd.f32 %v5755_v42, %v1421_v32  ;;  %v3023_v37 = vmax.f32 %v2827_v29, 0.0  ;;  %v2828_v38 = vadd.f32 %v5755_v42, %v1821_v35  ;;  %v2923_v43 = vmax.f32 %v2727_v27, 0.0 }
 0x14f   :  { %v2926_v40 = vmax.f32 %v2730_v31, 0.0  ;;  %v3026_v41 = vmax.f32 %v2830_v34, 0.0 }
 0x150   :  { %v2924_v44 = vmax.f32 %v2728_v36, 0.0  ;;  %v3024_v45 = vmax.f32 %v2828_v38, 0.0 }
 0x151   :  { %v4660_v46 = vpack.c.bf16 %v2926_v40, %v2925_v39  ;;  %v4910_v47 = vpack.c.bf16 %v3026_v41, %v3025_v33 }
 0x152   :  { %v4655_v48 = vpack.c.bf16 %v2924_v44, %v2923_v43  ;;  %v5331_v49 = vpop.f32.mrb[28].mxu0  ;;  %v4905_v50 = vpack.c.bf16 %v3024_v45, %v3023_v37  ;;  %v5431_v51 = vpop.f32.mrb[28].mxu1 }
 0x153   :  { %5094 = vst [vmem:[#allocation8 + $0x68] sm:$0xff] %v4660_v46   ;;  %5144 = vst [vmem:[#allocation8 + $0x1f8] sm:$0xff] %v4910_v47   ;;  %v2733_v52 = vadd.f32 %v5331_v49, %v5755_v42  ;;  %v1434_v53 = vpop.f32.mrb[29].mxu0  ;;  %v2833_v54 = vadd.f32 %v5431_v51, %v5755_v42  ;;  %v1834_v55 = vpop.f32.mrb[29].mxu1 }
 0x154   :  { %5093 = vst [vmem:[#allocation8 + $0x60] sm:$0xff] %v4655_v48   ;;  %5143 = vst [vmem:[#allocation8 + $0x1f0] sm:$0xff] %v4905_v50   ;;  %v2731_v56 = vadd.f32 %v5755_v42, %v1434_v53  ;;  %v5332_v57 = vpop.f32.mrb[30].mxu0  ;;  %v2831_v58 = vadd.f32 %v5755_v42, %v1834_v55  ;;  %v5432_v59 = vpop.f32.mrb[30].mxu1 }
 0x155   :  { %v2734_v60 = vadd.f32 %v5332_v57, %v5755_v42  ;;  %v1437_v61 = vpop.f32.mrb[31].mxu0  ;;  %v3029_v62 = vmax.f32 %v2833_v54, 0.0  ;;  %v2834_v63 = vadd.f32 %v5432_v59, %v5755_v42  ;;  %v1837_v0 = vpop.f32.mrb[31].mxu1  ;;  %v2929_v4 = vmax.f32 %v2733_v52, 0.0 }
 0x156   :  { %v2732_v1 = vadd.f32 %v5755_v42, %v1437_v61  ;;  %v3027_v2 = vmax.f32 %v2831_v58, 0.0  ;;  %v2832_v3 = vadd.f32 %v5755_v42, %v1837_v0  ;;  %v2927_v7 = vmax.f32 %v2731_v56, 0.0 }
 0x157   :  { %v2930_v5 = vmax.f32 %v2734_v60, 0.0  ;;  %v3030_v6 = vmax.f32 %v2834_v63, 0.0 }
 0x158   :  { %v2928_v8 = vmax.f32 %v2732_v1, 0.0  ;;  %v3028_v9 = vmax.f32 %v2832_v3, 0.0 }
 0x159   :  { %v4670_v10 = vpack.c.bf16 %v2930_v5, %v2929_v4  ;;  %v4920_v11 = vpack.c.bf16 %v3030_v6, %v3029_v62 }
 0x15a   :  { %v4665_v12 = vpack.c.bf16 %v2928_v8, %v2927_v7  ;;  %v5335_v13 = vpop.f32.mrb[32].mxu0  ;;  %v4915_v14 = vpack.c.bf16 %v3028_v9, %v3027_v2  ;;  %v5435_v15 = vpop.f32.mrb[32].mxu1 }
 0x15b   :  { %5096 = vst [vmem:[#allocation8 + $0x78] sm:$0xff] %v4670_v10   ;;  %5146 = vst [vmem:[#allocation8 + $0x208] sm:$0xff] %v4920_v11   ;;  %v2737_v16 = vadd.f32 %v5335_v13, %v5755_v42  ;;  %v1450_v17 = vpop.f32.mrb[33].mxu0  ;;  %v2837_v18 = vadd.f32 %v5435_v15, %v5755_v42  ;;  %v1850_v19 = vpop.f32.mrb[33].mxu1 }
 0x15c   :  { %5095 = vst [vmem:[#allocation8 + $0x70] sm:$0xff] %v4665_v12   ;;  %5145 = vst [vmem:[#allocation8 + $0x200] sm:$0xff] %v4915_v14   ;;  %v2735_v20 = vadd.f32 %v5755_v42, %v1450_v17  ;;  %v5336_v21 = vpop.f32.mrb[34].mxu0  ;;  %v2835_v22 = vadd.f32 %v5755_v42, %v1850_v19  ;;  %v5436_v23 = vpop.f32.mrb[34].mxu1 }
 0x15d   :  { %v2738_v24 = vadd.f32 %v5336_v21, %v5755_v42  ;;  %v1453_v25 = vpop.f32.mrb[35].mxu0  ;;  %v3033_v26 = vmax.f32 %v2837_v18, 0.0  ;;  %v2838_v27 = vadd.f32 %v5436_v23, %v5755_v42  ;;  %v1853_v28 = vpop.f32.mrb[35].mxu1  ;;  %v2933_v32 = vmax.f32 %v2737_v16, 0.0 }
 0x15e   :  { %v2736_v29 = vadd.f32 %v5755_v42, %v1453_v25  ;;  %v3031_v30 = vmax.f32 %v2835_v22, 0.0  ;;  %v2836_v31 = vadd.f32 %v5755_v42, %v1853_v28  ;;  %v2931_v35 = vmax.f32 %v2735_v20, 0.0 }
 0x15f   :  { %v2934_v33 = vmax.f32 %v2738_v24, 0.0  ;;  %v3034_v34 = vmax.f32 %v2838_v27, 0.0 }
 0x160   :  { %v2932_v36 = vmax.f32 %v2736_v29, 0.0  ;;  %v3032_v37 = vmax.f32 %v2836_v31, 0.0 }
 0x161   :  { %v4680_v38 = vpack.c.bf16 %v2934_v33, %v2933_v32  ;;  %v4930_v39 = vpack.c.bf16 %v3034_v34, %v3033_v26 }
 0x162   :  { %v4675_v40 = vpack.c.bf16 %v2932_v36, %v2931_v35  ;;  %v5339_v41 = vpop.f32.mrb[36].mxu0  ;;  %v4925_v43 = vpack.c.bf16 %v3032_v37, %v3031_v30  ;;  %v5439_v44 = vpop.f32.mrb[36].mxu1 }
 0x163   :  { %5098 = vst [vmem:[#allocation8 + $0x88] sm:$0xff] %v4680_v38   ;;  %5148 = vst [vmem:[#allocation8 + $0x218] sm:$0xff] %v4930_v39   ;;  %v2741_v45 = vadd.f32 %v5339_v41, %v5755_v42  ;;  %v1466_v46 = vpop.f32.mrb[37].mxu0  ;;  %v2841_v47 = vadd.f32 %v5439_v44, %v5755_v42  ;;  %v1866_v48 = vpop.f32.mrb[37].mxu1 }
 0x164   :  { %5097 = vst [vmem:[#allocation8 + $0x80] sm:$0xff] %v4675_v40   ;;  %5147 = vst [vmem:[#allocation8 + $0x210] sm:$0xff] %v4925_v43   ;;  %v2739_v49 = vadd.f32 %v5755_v42, %v1466_v46  ;;  %v5340_v50 = vpop.f32.mrb[38].mxu0  ;;  %v2839_v51 = vadd.f32 %v5755_v42, %v1866_v48  ;;  %v5440_v52 = vpop.f32.mrb[38].mxu1 }
 0x165   :  { %v2742_v53 = vadd.f32 %v5340_v50, %v5755_v42  ;;  %v1469_v54 = vpop.f32.mrb[39].mxu0  ;;  %v3037_v55 = vmax.f32 %v2841_v47, 0.0  ;;  %v2842_v56 = vadd.f32 %v5440_v52, %v5755_v42  ;;  %v1869_v57 = vpop.f32.mrb[39].mxu1  ;;  %v2937_v61 = vmax.f32 %v2741_v45, 0.0 }
 0x166   :  { %v2740_v58 = vadd.f32 %v5755_v42, %v1469_v54  ;;  %v3035_v59 = vmax.f32 %v2839_v51, 0.0  ;;  %v2840_v60 = vadd.f32 %v5755_v42, %v1869_v57  ;;  %v2935_v0 = vmax.f32 %v2739_v49, 0.0 }
 0x167   :  { %v2938_v62 = vmax.f32 %v2742_v53, 0.0  ;;  %v3038_v63 = vmax.f32 %v2842_v56, 0.0 }
 0x168   :  { %v2936_v1 = vmax.f32 %v2740_v58, 0.0  ;;  %v3036_v2 = vmax.f32 %v2840_v60, 0.0 }
 0x169   :  { %v4690_v3 = vpack.c.bf16 %v2938_v62, %v2937_v61  ;;  %v4940_v4 = vpack.c.bf16 %v3038_v63, %v3037_v55 }
 0x16a   :  { %v4685_v5 = vpack.c.bf16 %v2936_v1, %v2935_v0  ;;  %v5343_v6 = vpop.f32.mrb[40].mxu0  ;;  %v4935_v7 = vpack.c.bf16 %v3036_v2, %v3035_v59  ;;  %v5443_v8 = vpop.f32.mrb[40].mxu1 }
 0x16b   :  { %5100 = vst [vmem:[#allocation8 + $0x98] sm:$0xff] %v4690_v3   ;;  %5150 = vst [vmem:[#allocation8 + $0x228] sm:$0xff] %v4940_v4   ;;  %v2745_v9 = vadd.f32 %v5343_v6, %v5755_v42  ;;  %v1482_v10 = vpop.f32.mrb[41].mxu0  ;;  %v2845_v11 = vadd.f32 %v5443_v8, %v5755_v42  ;;  %v1882_v12 = vpop.f32.mrb[41].mxu1 }
 0x16c   :  { %5099 = vst [vmem:[#allocation8 + $0x90] sm:$0xff] %v4685_v5   ;;  %5149 = vst [vmem:[#allocation8 + $0x220] sm:$0xff] %v4935_v7   ;;  %v2743_v13 = vadd.f32 %v5755_v42, %v1482_v10  ;;  %v5344_v14 = vpop.f32.mrb[42].mxu0  ;;  %v2843_v15 = vadd.f32 %v5755_v42, %v1882_v12  ;;  %v5444_v16 = vpop.f32.mrb[42].mxu1 }
 0x16d   :  { %v2746_v17 = vadd.f32 %v5344_v14, %v5755_v42  ;;  %v1485_v18 = vpop.f32.mrb[43].mxu0  ;;  %v3041_v19 = vmax.f32 %v2845_v11, 0.0  ;;  %v2846_v20 = vadd.f32 %v5444_v16, %v5755_v42  ;;  %v1885_v21 = vpop.f32.mrb[43].mxu1  ;;  %v2941_v25 = vmax.f32 %v2745_v9, 0.0 }
 0x16e   :  { %v2744_v22 = vadd.f32 %v5755_v42, %v1485_v18  ;;  %v3039_v23 = vmax.f32 %v2843_v15, 0.0  ;;  %v2844_v24 = vadd.f32 %v5755_v42, %v1885_v21  ;;  %v2939_v28 = vmax.f32 %v2743_v13, 0.0 }
 0x16f   :  { %v2942_v26 = vmax.f32 %v2746_v17, 0.0  ;;  %v3042_v27 = vmax.f32 %v2846_v20, 0.0 }
 0x170   :  { %v2940_v29 = vmax.f32 %v2744_v22, 0.0  ;;  %v3040_v30 = vmax.f32 %v2844_v24, 0.0 }
 0x171   :  { %v4700_v31 = vpack.c.bf16 %v2942_v26, %v2941_v25  ;;  %v4950_v32 = vpack.c.bf16 %v3042_v27, %v3041_v19 }
 0x172   :  { %v4695_v33 = vpack.c.bf16 %v2940_v29, %v2939_v28  ;;  %v5347_v34 = vpop.f32.mrb[44].mxu0  ;;  %v4945_v35 = vpack.c.bf16 %v3040_v30, %v3039_v23  ;;  %v5447_v36 = vpop.f32.mrb[44].mxu1 }
 0x173   :  { %5102 = vst [vmem:[#allocation8 + $0xa8] sm:$0xff] %v4700_v31   ;;  %5152 = vst [vmem:[#allocation8 + $0x238] sm:$0xff] %v4950_v32   ;;  %v2749_v37 = vadd.f32 %v5347_v34, %v5755_v42  ;;  %v1498_v38 = vpop.f32.mrb[45].mxu0  ;;  %v2849_v39 = vadd.f32 %v5447_v36, %v5755_v42  ;;  %v1898_v40 = vpop.f32.mrb[45].mxu1 }
 0x174   :  { %5101 = vst [vmem:[#allocation8 + $0xa0] sm:$0xff] %v4695_v33   ;;  %5151 = vst [vmem:[#allocation8 + $0x230] sm:$0xff] %v4945_v35   ;;  %v2747_v41 = vadd.f32 %v5755_v42, %v1498_v38  ;;  %v5348_v43 = vpop.f32.mrb[46].mxu0  ;;  %v2847_v44 = vadd.f32 %v5755_v42, %v1898_v40  ;;  %v5448_v45 = vpop.f32.mrb[46].mxu1 }
 0x175   :  { %v2750_v46 = vadd.f32 %v5348_v43, %v5755_v42  ;;  %v1501_v47 = vpop.f32.mrb[47].mxu0  ;;  %v3045_v48 = vmax.f32 %v2849_v39, 0.0  ;;  %v2850_v49 = vadd.f32 %v5448_v45, %v5755_v42  ;;  %v1901_v50 = vpop.f32.mrb[47].mxu1  ;;  %v2945_v54 = vmax.f32 %v2749_v37, 0.0 }
 0x176   :  { %v2748_v51 = vadd.f32 %v5755_v42, %v1501_v47  ;;  %v3043_v52 = vmax.f32 %v2847_v44, 0.0  ;;  %v2848_v53 = vadd.f32 %v5755_v42, %v1901_v50  ;;  %v2943_v57 = vmax.f32 %v2747_v41, 0.0 }
 0x177   :  { %v2946_v55 = vmax.f32 %v2750_v46, 0.0  ;;  %v3046_v56 = vmax.f32 %v2850_v49, 0.0 }
 0x178   :  { %v2944_v58 = vmax.f32 %v2748_v51, 0.0  ;;  %v3044_v59 = vmax.f32 %v2848_v53, 0.0 }
 0x179   :  { %v4710_v60 = vpack.c.bf16 %v2946_v55, %v2945_v54  ;;  %v4960_v61 = vpack.c.bf16 %v3046_v56, %v3045_v48 }
 0x17a   :  { %v4705_v62 = vpack.c.bf16 %v2944_v58, %v2943_v57  ;;  %v5351_v63 = vpop.f32.mrb[48].mxu0  ;;  %v4955_v0 = vpack.c.bf16 %v3044_v59, %v3043_v52  ;;  %v5451_v1 = vpop.f32.mrb[48].mxu1 }
 0x17b   :  { %5104 = vst [vmem:[#allocation8 + $0xb8] sm:$0xff] %v4710_v60   ;;  %5154 = vst [vmem:[#allocation8 + $0x248] sm:$0xff] %v4960_v61   ;;  %v2753_v2 = vadd.f32 %v5351_v63, %v5755_v42  ;;  %v1514_v3 = vpop.f32.mrb[49].mxu0  ;;  %v2853_v4 = vadd.f32 %v5451_v1, %v5755_v42  ;;  %v1914_v5 = vpop.f32.mrb[49].mxu1 }
 0x17c   :  { %5103 = vst [vmem:[#allocation8 + $0xb0] sm:$0xff] %v4705_v62   ;;  %5153 = vst [vmem:[#allocation8 + $0x240] sm:$0xff] %v4955_v0   ;;  %v2751_v6 = vadd.f32 %v5755_v42, %v1514_v3  ;;  %v5352_v7 = vpop.f32.mrb[50].mxu0  ;;  %v2851_v8 = vadd.f32 %v5755_v42, %v1914_v5  ;;  %v5452_v9 = vpop.f32.mrb[50].mxu1 }
 0x17d   :  { %v2754_v10 = vadd.f32 %v5352_v7, %v5755_v42  ;;  %v1517_v11 = vpop.f32.mrb[51].mxu0  ;;  %v3049_v12 = vmax.f32 %v2853_v4, 0.0  ;;  %v2854_v13 = vadd.f32 %v5452_v9, %v5755_v42  ;;  %v1917_v14 = vpop.f32.mrb[51].mxu1  ;;  %v2949_v18 = vmax.f32 %v2753_v2, 0.0 }
 0x17e   :  { %v2752_v15 = vadd.f32 %v5755_v42, %v1517_v11  ;;  %v3047_v16 = vmax.f32 %v2851_v8, 0.0  ;;  %v2852_v17 = vadd.f32 %v5755_v42, %v1917_v14  ;;  %v2947_v21 = vmax.f32 %v2751_v6, 0.0 }
 0x17f   :  { %v2950_v19 = vmax.f32 %v2754_v10, 0.0  ;;  %v3050_v20 = vmax.f32 %v2854_v13, 0.0 }
 0x180   :  { %v2948_v22 = vmax.f32 %v2752_v15, 0.0  ;;  %v3048_v23 = vmax.f32 %v2852_v17, 0.0 }
 0x181   :  { %v4720_v24 = vpack.c.bf16 %v2950_v19, %v2949_v18  ;;  %v4970_v25 = vpack.c.bf16 %v3050_v20, %v3049_v12 }
 0x182   :  { %v4715_v26 = vpack.c.bf16 %v2948_v22, %v2947_v21  ;;  %v5355_v27 = vpop.f32.mrb[52].mxu0  ;;  %v4965_v28 = vpack.c.bf16 %v3048_v23, %v3047_v16  ;;  %v5455_v29 = vpop.f32.mrb[52].mxu1 }
 0x183   :  { %5106 = vst [vmem:[#allocation8 + $0xc8] sm:$0xff] %v4720_v24   ;;  %5156 = vst [vmem:[#allocation8 + $0x258] sm:$0xff] %v4970_v25   ;;  %v2757_v30 = vadd.f32 %v5355_v27, %v5755_v42  ;;  %v1530_v31 = vpop.f32.mrb[53].mxu0  ;;  %v2857_v32 = vadd.f32 %v5455_v29, %v5755_v42  ;;  %v1930_v33 = vpop.f32.mrb[53].mxu1 }
 0x184   :  { %5105 = vst [vmem:[#allocation8 + $0xc0] sm:$0xff] %v4715_v26   ;;  %5155 = vst [vmem:[#allocation8 + $0x250] sm:$0xff] %v4965_v28   ;;  %v2755_v34 = vadd.f32 %v5755_v42, %v1530_v31  ;;  %v5356_v35 = vpop.f32.mrb[54].mxu0  ;;  %v2855_v36 = vadd.f32 %v5755_v42, %v1930_v33  ;;  %v5456_v37 = vpop.f32.mrb[54].mxu1 }
 0x185   :  { %v2758_v38 = vadd.f32 %v5356_v35, %v5755_v42  ;;  %v1533_v39 = vpop.f32.mrb[55].mxu0  ;;  %v3053_v40 = vmax.f32 %v2857_v32, 0.0  ;;  %v2858_v41 = vadd.f32 %v5456_v37, %v5755_v42  ;;  %v1933_v43 = vpop.f32.mrb[55].mxu1  ;;  %v2953_v47 = vmax.f32 %v2757_v30, 0.0 }
 0x186   :  { %v2756_v44 = vadd.f32 %v5755_v42, %v1533_v39  ;;  %v3051_v45 = vmax.f32 %v2855_v36, 0.0  ;;  %v2856_v46 = vadd.f32 %v5755_v42, %v1933_v43  ;;  %v2951_v50 = vmax.f32 %v2755_v34, 0.0 }
 0x187   :  { %v2954_v48 = vmax.f32 %v2758_v38, 0.0  ;;  %v3054_v49 = vmax.f32 %v2858_v41, 0.0 }
 0x188   :  { %v2952_v51 = vmax.f32 %v2756_v44, 0.0  ;;  %v3052_v52 = vmax.f32 %v2856_v46, 0.0 }
 0x189   :  { %v4730_v53 = vpack.c.bf16 %v2954_v48, %v2953_v47  ;;  %v4980_v54 = vpack.c.bf16 %v3054_v49, %v3053_v40 }
 0x18a   :  { %v4725_v55 = vpack.c.bf16 %v2952_v51, %v2951_v50  ;;  %v5359_v56 = vpop.f32.mrb[56].mxu0  ;;  %v4975_v57 = vpack.c.bf16 %v3052_v52, %v3051_v45  ;;  %v5459_v58 = vpop.f32.mrb[56].mxu1  ;;  %v5888_v52 = vld [vmem:[%s5975_s2] ss:$0 sm:$0xff]  ;;  %s5701_s2 = smov [#allocation8]  }
 0x18b   :  { %5108 = vst [vmem:[#allocation8 + $0xd8] sm:$0xff] %v4730_v53   ;;  %5158 = vst [vmem:[#allocation8 + $0x268] sm:$0xff] %v4980_v54   ;;  %v2761_v59 = vadd.f32 %v5359_v56, %v5755_v42  ;;  %v1546_v60 = vpop.f32.mrb[57].mxu0  ;;  %v2861_v61 = vadd.f32 %v5459_v58, %v5755_v42  ;;  %v1946_v62 = vpop.f32.mrb[57].mxu1  ;;  %s4080_s13 = sshll.u32 %s5701_s2, 4  ;;  %s4081_s13 = int_to_ptr.vmem [resolvable:$true] %s4080_s13 }
 0x18c   :  { %5107 = vst [vmem:[#allocation8 + $0xd0] sm:$0xff] %v4725_v55   ;;  %5157 = vst [vmem:[#allocation8 + $0x260] sm:$0xff] %v4975_v57   ;;  %v2759_v63 = vadd.f32 %v5755_v42, %v1546_v60  ;;  %v5360_v0 = vpop.f32.mrb[58].mxu0  ;;  %v2859_v1 = vadd.f32 %v5755_v42, %v1946_v62  ;;  %v5460_v2 = vpop.f32.mrb[58].mxu1  ;;  %s5669_s14 = scalar_lea.vmem %s4081_s13, 12544  ;;  %p5674_p3 = scmp.lt.s32.totalorder %s4081_s13, %s4081_s13 }
 0x18d   :  { %v2762_v3 = vadd.f32 %v5360_v0, %v5755_v42  ;;  %v1549_v4 = vpop.f32.mrb[59].mxu0  ;;  %v3057_v5 = vmax.f32 %v2861_v61, 0.0  ;;  %v2862_v6 = vadd.f32 %v5460_v2, %v5755_v42  ;;  %v1949_v7 = vpop.f32.mrb[59].mxu1  ;;  %v2957_v11 = vmax.f32 %v2761_v59, 0.0  ;;  %p5670_p2 = scmp.ne.s32.totalorder %s4081_s13, %s5669_s14  ;;  %p5675_p4 = scmp.lt.s32.totalorder %s5669_s14, %s5669_s14 }
 0x18e   :  { %v2760_v8 = vadd.f32 %v5755_v42, %v1549_v4  ;;  %v3055_v9 = vmax.f32 %v2859_v1, 0.0  ;;  %v2860_v10 = vadd.f32 %v5755_v42, %v1949_v7  ;;  %v2955_v14 = vmax.f32 %v2759_v63, 0.0 }
 0x18f   :  { %v2958_v12 = vmax.f32 %v2762_v3, 0.0  ;;  %v3058_v13 = vmax.f32 %v2862_v6, 0.0  ;;  %p5676_p5 = por %p5675_p4, %p5674_p3 }
 0x190   :  { %v2956_v15 = vmax.f32 %v2760_v8, 0.0  ;;  %v3056_v16 = vmax.f32 %v2860_v10, 0.0 }
 0x191   :  { %v4740_v17 = vpack.c.bf16 %v2958_v12, %v2957_v11  ;;  %v4990_v18 = vpack.c.bf16 %v3058_v13, %v3057_v5  ;;  %p5677_p6 = pnand %p5676_p5, %p5670_p2 }
 0x192   :  { %v4735_v19 = vpack.c.bf16 %v2956_v15, %v2955_v14  ;;  %v5363_v20 = vpop.f32.mrb[60].mxu0  ;;  %v4985_v21 = vpack.c.bf16 %v3056_v16, %v3055_v9  ;;  %v5463_v22 = vpop.f32.mrb[60].mxu1 }
 0x193   :  { %5110 = vst [vmem:[#allocation8 + $0xe8] sm:$0xff] %v4740_v17   ;;  %5160 = vst [vmem:[#allocation8 + $0x278] sm:$0xff] %v4990_v18   ;;  %v2765_v23 = vadd.f32 %v5363_v20, %v5755_v42  ;;  %v1562_v24 = vpop.f32.mrb[61].mxu0  ;;  %v2865_v25 = vadd.f32 %v5463_v22, %v5755_v42  ;;  %v1962_v26 = vpop.f32.mrb[61].mxu1 }
 0x194   :  { %5109 = vst [vmem:[#allocation8 + $0xe0] sm:$0xff] %v4735_v19   ;;  %5159 = vst [vmem:[#allocation8 + $0x270] sm:$0xff] %v4985_v21   ;;  %v2763_v27 = vadd.f32 %v5755_v42, %v1562_v24  ;;  %v5364_v28 = vpop.f32.mrb[62].mxu0  ;;  %v2863_v29 = vadd.f32 %v5755_v42, %v1962_v26  ;;  %v5464_v30 = vpop.f32.mrb[62].mxu1 }
 0x195   :  { %v2766_v31 = vadd.f32 %v5364_v28, %v5755_v42  ;;  %v1565_v32 = vpop.f32.mrb[63].mxu0  ;;  %v3061_v33 = vmax.f32 %v2865_v25, 0.0  ;;  %v2866_v34 = vadd.f32 %v5464_v30, %v5755_v42  ;;  %v1965_v35 = vpop.f32.mrb[63].mxu1  ;;  %v2961_v39 = vmax.f32 %v2765_v23, 0.0 }
 0x196   :  { %v2764_v36 = vadd.f32 %v5755_v42, %v1565_v32  ;;  %v3059_v37 = vmax.f32 %v2863_v29, 0.0  ;;  %v2864_v38 = vadd.f32 %v5755_v42, %v1965_v35  ;;  %v2959_v43 = vmax.f32 %v2763_v27, 0.0 }
 0x197   :  { %v2962_v40 = vmax.f32 %v2766_v31, 0.0  ;;  %v3062_v41 = vmax.f32 %v2866_v34, 0.0 }
 0x198   :  { %v2960_v44 = vmax.f32 %v2764_v36, 0.0  ;;  %v3060_v45 = vmax.f32 %v2864_v38, 0.0 }
 0x199   :  { %v4750_v46 = vpack.c.bf16 %v2962_v40, %v2961_v39  ;;  %v5000_v47 = vpack.c.bf16 %v3062_v41, %v3061_v33 }
 0x19a   :  { %v4745_v48 = vpack.c.bf16 %v2960_v44, %v2959_v43  ;;  %v5367_v49 = vpop.f32.mrb[64].mxu0  ;;  %v4995_v50 = vpack.c.bf16 %v3060_v45, %v3059_v37  ;;  %v5467_v51 = vpop.f32.mrb[64].mxu1 }
 0x19b   :  { %5112 = vst [vmem:[#allocation8 + $0xf8] sm:$0xff] %v4750_v46   ;;  %5162 = vst [vmem:[#allocation8 + $0x288] sm:$0xff] %v5000_v47   ;;  %v2769_v42 = vadd.f32 %v5888_v52, %v5367_v49  ;;  %v1578_v53 = vpop.f32.mrb[65].mxu0  ;;  %v2869_v54 = vadd.f32 %v5888_v52, %v5467_v51  ;;  %v1978_v55 = vpop.f32.mrb[65].mxu1 }
 0x19c   :  { %5111 = vst [vmem:[#allocation8 + $0xf0] sm:$0xff] %v4745_v48   ;;  %5161 = vst [vmem:[#allocation8 + $0x280] sm:$0xff] %v4995_v50   ;;  %v2767_v56 = vadd.f32 %v5888_v52, %v1578_v53  ;;  %v5368_v57 = vpop.f32.mrb[66].mxu0  ;;  %v2867_v58 = vadd.f32 %v5888_v52, %v1978_v55  ;;  %v5468_v59 = vpop.f32.mrb[66].mxu1 }
 0x19d   :  { %v2770_v60 = vadd.f32 %v5888_v52, %v5368_v57  ;;  %v1581_v61 = vpop.f32.mrb[67].mxu0  ;;  %v3065_v62 = vmax.f32 %v2869_v54, 0.0  ;;  %v2870_v63 = vadd.f32 %v5888_v52, %v5468_v59  ;;  %v1981_v0 = vpop.f32.mrb[67].mxu1  ;;  %v2965_v4 = vmax.f32 %v2769_v42, 0.0 }
 0x19e   :  { %v2768_v1 = vadd.f32 %v5888_v52, %v1581_v61  ;;  %v3063_v2 = vmax.f32 %v2867_v58, 0.0  ;;  %v2868_v3 = vadd.f32 %v5888_v52, %v1981_v0  ;;  %v2963_v7 = vmax.f32 %v2767_v56, 0.0 }
 0x19f   :  { %v2966_v5 = vmax.f32 %v2770_v60, 0.0  ;;  %v3066_v6 = vmax.f32 %v2870_v63, 0.0 }
 0x1a0   :  { %v2964_v8 = vmax.f32 %v2768_v1, 0.0  ;;  %v3064_v9 = vmax.f32 %v2868_v3, 0.0 }
 0x1a1   :  { %v4760_v10 = vpack.c.bf16 %v2966_v5, %v2965_v4  ;;  %v5010_v11 = vpack.c.bf16 %v3066_v6, %v3065_v62 }
 0x1a2   :  { %v4755_v12 = vpack.c.bf16 %v2964_v8, %v2963_v7  ;;  %v5371_v13 = vpop.f32.mrb[68].mxu0  ;;  %v5005_v14 = vpack.c.bf16 %v3064_v9, %v3063_v2  ;;  %v5471_v15 = vpop.f32.mrb[68].mxu1 }
 0x1a3   :  { %5114 = vst [vmem:[#allocation8 + $0x108] sm:$0xff] %v4760_v10   ;;  %5164 = vst [vmem:[#allocation8 + $0x298] sm:$0xff] %v5010_v11   ;;  %v2773_v16 = vadd.f32 %v5888_v52, %v5371_v13  ;;  %v1594_v17 = vpop.f32.mrb[69].mxu0  ;;  %v2873_v18 = vadd.f32 %v5888_v52, %v5471_v15  ;;  %v1994_v19 = vpop.f32.mrb[69].mxu1 }
 0x1a4   :  { %5113 = vst [vmem:[#allocation8 + $0x100] sm:$0xff] %v4755_v12   ;;  %5163 = vst [vmem:[#allocation8 + $0x290] sm:$0xff] %v5005_v14   ;;  %v2771_v20 = vadd.f32 %v5888_v52, %v1594_v17  ;;  %v5372_v21 = vpop.f32.mrb[70].mxu0  ;;  %v2871_v22 = vadd.f32 %v5888_v52, %v1994_v19  ;;  %v5472_v23 = vpop.f32.mrb[70].mxu1 }
 0x1a5   :  { %v2774_v24 = vadd.f32 %v5888_v52, %v5372_v21  ;;  %v1597_v25 = vpop.f32.mrb[71].mxu0  ;;  %v3069_v26 = vmax.f32 %v2873_v18, 0.0  ;;  %v2874_v27 = vadd.f32 %v5888_v52, %v5472_v23  ;;  %v1997_v28 = vpop.f32.mrb[71].mxu1  ;;  %v2969_v32 = vmax.f32 %v2773_v16, 0.0 }
 0x1a6   :  { %v2772_v29 = vadd.f32 %v5888_v52, %v1597_v25  ;;  %v3067_v30 = vmax.f32 %v2871_v22, 0.0  ;;  %v2872_v31 = vadd.f32 %v5888_v52, %v1997_v28  ;;  %v2967_v35 = vmax.f32 %v2771_v20, 0.0 }
 0x1a7   :  { %v2970_v33 = vmax.f32 %v2774_v24, 0.0  ;;  %v3070_v34 = vmax.f32 %v2874_v27, 0.0 }
 0x1a8   :  { %v2968_v36 = vmax.f32 %v2772_v29, 0.0  ;;  %v3068_v37 = vmax.f32 %v2872_v31, 0.0 }
 0x1a9   :  { %v4770_v38 = vpack.c.bf16 %v2970_v33, %v2969_v32  ;;  %v5020_v39 = vpack.c.bf16 %v3070_v34, %v3069_v26 }
 0x1aa   :  { %v4765_v40 = vpack.c.bf16 %v2968_v36, %v2967_v35  ;;  %v5375_v41 = vpop.f32.mrb[72].mxu0  ;;  %v5015_v43 = vpack.c.bf16 %v3068_v37, %v3067_v30  ;;  %v5475_v44 = vpop.f32.mrb[72].mxu1 }
 0x1ab   :  { %5116 = vst [vmem:[#allocation8 + $0x118] sm:$0xff] %v4770_v38   ;;  %5166 = vst [vmem:[#allocation8 + $0x2a8] sm:$0xff] %v5020_v39   ;;  %v2777_v45 = vadd.f32 %v5888_v52, %v5375_v41  ;;  %v1610_v46 = vpop.f32.mrb[73].mxu0  ;;  %v2877_v47 = vadd.f32 %v5888_v52, %v5475_v44  ;;  %v2010_v48 = vpop.f32.mrb[73].mxu1 }
 0x1ac   :  { %5115 = vst [vmem:[#allocation8 + $0x110] sm:$0xff] %v4765_v40   ;;  %5165 = vst [vmem:[#allocation8 + $0x2a0] sm:$0xff] %v5015_v43   ;;  %v2775_v49 = vadd.f32 %v5888_v52, %v1610_v46  ;;  %v5376_v50 = vpop.f32.mrb[74].mxu0  ;;  %v2875_v51 = vadd.f32 %v5888_v52, %v2010_v48  ;;  %v5476_v42 = vpop.f32.mrb[74].mxu1 }
 0x1ad   :  { %v2778_v53 = vadd.f32 %v5888_v52, %v5376_v50  ;;  %v1613_v54 = vpop.f32.mrb[75].mxu0  ;;  %v3073_v55 = vmax.f32 %v2877_v47, 0.0  ;;  %v2878_v56 = vadd.f32 %v5888_v52, %v5476_v42  ;;  %v2013_v57 = vpop.f32.mrb[75].mxu1  ;;  %v2973_v61 = vmax.f32 %v2777_v45, 0.0 }
 0x1ae   :  { %v2776_v58 = vadd.f32 %v5888_v52, %v1613_v54  ;;  %v3071_v59 = vmax.f32 %v2875_v51, 0.0  ;;  %v2876_v60 = vadd.f32 %v5888_v52, %v2013_v57  ;;  %v2971_v0 = vmax.f32 %v2775_v49, 0.0 }
 0x1af   :  { %v2974_v62 = vmax.f32 %v2778_v53, 0.0  ;;  %v3074_v63 = vmax.f32 %v2878_v56, 0.0 }
 0x1b0   :  { %v2972_v1 = vmax.f32 %v2776_v58, 0.0  ;;  %v3072_v2 = vmax.f32 %v2876_v60, 0.0 }
 0x1b1   :  { %v4780_v3 = vpack.c.bf16 %v2974_v62, %v2973_v61  ;;  %v5030_v4 = vpack.c.bf16 %v3074_v63, %v3073_v55 }
 0x1b2   :  { %v4775_v5 = vpack.c.bf16 %v2972_v1, %v2971_v0  ;;  %v5379_v6 = vpop.f32.mrb[76].mxu0  ;;  %v5025_v7 = vpack.c.bf16 %v3072_v2, %v3071_v59  ;;  %v5479_v8 = vpop.f32.mrb[76].mxu1 }
 0x1b3   :  { %5118 = vst [vmem:[#allocation8 + $0x128] sm:$0xff] %v4780_v3   ;;  %5168 = vst [vmem:[#allocation8 + $0x2b8] sm:$0xff] %v5030_v4   ;;  %v2781_v9 = vadd.f32 %v5888_v52, %v5379_v6  ;;  %v1626_v10 = vpop.f32.mrb[77].mxu0  ;;  %v2881_v11 = vadd.f32 %v5888_v52, %v5479_v8  ;;  %v2026_v12 = vpop.f32.mrb[77].mxu1 }
 0x1b4   :  { %5117 = vst [vmem:[#allocation8 + $0x120] sm:$0xff] %v4775_v5   ;;  %5167 = vst [vmem:[#allocation8 + $0x2b0] sm:$0xff] %v5025_v7   ;;  %v2779_v13 = vadd.f32 %v5888_v52, %v1626_v10  ;;  %v5380_v14 = vpop.f32.mrb[78].mxu0  ;;  %v2879_v15 = vadd.f32 %v5888_v52, %v2026_v12  ;;  %v5480_v16 = vpop.f32.mrb[78].mxu1 }
 0x1b5   :  { %v2782_v17 = vadd.f32 %v5888_v52, %v5380_v14  ;;  %v1629_v18 = vpop.f32.mrb[79].mxu0  ;;  %v3077_v19 = vmax.f32 %v2881_v11, 0.0  ;;  %v2882_v20 = vadd.f32 %v5888_v52, %v5480_v16  ;;  %v2029_v21 = vpop.f32.mrb[79].mxu1  ;;  %v2977_v25 = vmax.f32 %v2781_v9, 0.0 }
 0x1b6   :  { %v2780_v22 = vadd.f32 %v5888_v52, %v1629_v18  ;;  %v3075_v23 = vmax.f32 %v2879_v15, 0.0  ;;  %v2880_v24 = vadd.f32 %v5888_v52, %v2029_v21  ;;  %v2975_v28 = vmax.f32 %v2779_v13, 0.0 }
 0x1b7   :  { %v2978_v26 = vmax.f32 %v2782_v17, 0.0  ;;  %v3078_v27 = vmax.f32 %v2882_v20, 0.0 }
 0x1b8   :  { %v2976_v29 = vmax.f32 %v2780_v22, 0.0  ;;  %v3076_v30 = vmax.f32 %v2880_v24, 0.0 }
 0x1b9   :  { %v4790_v31 = vpack.c.bf16 %v2978_v26, %v2977_v25  ;;  %v5040_v32 = vpack.c.bf16 %v3078_v27, %v3077_v19 }
 0x1ba   :  { %v4785_v33 = vpack.c.bf16 %v2976_v29, %v2975_v28  ;;  %v5383_v34 = vpop.f32.mrb[80].mxu0  ;;  %v5035_v35 = vpack.c.bf16 %v3076_v30, %v3075_v23  ;;  %v5483_v36 = vpop.f32.mrb[80].mxu1 }
 0x1bb   :  { %5120 = vst [vmem:[#allocation8 + $0x138] sm:$0xff] %v4790_v31   ;;  %5170 = vst [vmem:[#allocation8 + $0x2c8] sm:$0xff] %v5040_v32   ;;  %v2785_v37 = vadd.f32 %v5888_v52, %v5383_v34  ;;  %v1642_v38 = vpop.f32.mrb[81].mxu0  ;;  %v2885_v39 = vadd.f32 %v5888_v52, %v5483_v36  ;;  %v2042_v40 = vpop.f32.mrb[81].mxu1 }
 0x1bc   :  { %5119 = vst [vmem:[#allocation8 + $0x130] sm:$0xff] %v4785_v33   ;;  %5169 = vst [vmem:[#allocation8 + $0x2c0] sm:$0xff] %v5035_v35   ;;  %v2783_v41 = vadd.f32 %v5888_v52, %v1642_v38  ;;  %v5384_v43 = vpop.f32.mrb[82].mxu0  ;;  %v2883_v44 = vadd.f32 %v5888_v52, %v2042_v40  ;;  %v5484_v45 = vpop.f32.mrb[82].mxu1 }
 0x1bd   :  { %v2786_v46 = vadd.f32 %v5888_v52, %v5384_v43  ;;  %v1645_v47 = vpop.f32.mrb[83].mxu0  ;;  %v3081_v48 = vmax.f32 %v2885_v39, 0.0  ;;  %v2886_v49 = vadd.f32 %v5888_v52, %v5484_v45  ;;  %v2045_v50 = vpop.f32.mrb[83].mxu1  ;;  %v2981_v54 = vmax.f32 %v2785_v37, 0.0 }
 0x1be   :  { %v2784_v51 = vadd.f32 %v5888_v52, %v1645_v47  ;;  %v3079_v42 = vmax.f32 %v2883_v44, 0.0  ;;  %v2884_v53 = vadd.f32 %v5888_v52, %v2045_v50  ;;  %v2979_v57 = vmax.f32 %v2783_v41, 0.0 }
 0x1bf   :  { %v2982_v55 = vmax.f32 %v2786_v46, 0.0  ;;  %v3082_v56 = vmax.f32 %v2886_v49, 0.0 }
 0x1c0   :  { %v2980_v58 = vmax.f32 %v2784_v51, 0.0  ;;  %v3080_v59 = vmax.f32 %v2884_v53, 0.0 }
 0x1c1   :  { %v4800_v60 = vpack.c.bf16 %v2982_v55, %v2981_v54  ;;  %v5050_v61 = vpack.c.bf16 %v3082_v56, %v3081_v48 }
 0x1c2   :  { %v4795_v62 = vpack.c.bf16 %v2980_v58, %v2979_v57  ;;  %v5387_v63 = vpop.f32.mrb[84].mxu0  ;;  %v5045_v0 = vpack.c.bf16 %v3080_v59, %v3079_v42  ;;  %v5487_v1 = vpop.f32.mrb[84].mxu1 }
 0x1c3   :  { %5122 = vst [vmem:[#allocation8 + $0x148] sm:$0xff] %v4800_v60   ;;  %5172 = vst [vmem:[#allocation8 + $0x2d8] sm:$0xff] %v5050_v61   ;;  %v2789_v2 = vadd.f32 %v5888_v52, %v5387_v63  ;;  %v1658_v3 = vpop.f32.mrb[85].mxu0  ;;  %v2889_v4 = vadd.f32 %v5888_v52, %v5487_v1  ;;  %v2058_v5 = vpop.f32.mrb[85].mxu1 }
 0x1c4   :  { %5121 = vst [vmem:[#allocation8 + $0x140] sm:$0xff] %v4795_v62   ;;  %5171 = vst [vmem:[#allocation8 + $0x2d0] sm:$0xff] %v5045_v0   ;;  %v2787_v6 = vadd.f32 %v5888_v52, %v1658_v3  ;;  %v5388_v7 = vpop.f32.mrb[86].mxu0  ;;  %v2887_v8 = vadd.f32 %v5888_v52, %v2058_v5  ;;  %v5488_v9 = vpop.f32.mrb[86].mxu1 }
 0x1c5   :  { %v2790_v10 = vadd.f32 %v5888_v52, %v5388_v7  ;;  %v1661_v11 = vpop.f32.mrb[87].mxu0  ;;  %v3085_v12 = vmax.f32 %v2889_v4, 0.0  ;;  %v2890_v13 = vadd.f32 %v5888_v52, %v5488_v9  ;;  %v2061_v14 = vpop.f32.mrb[87].mxu1  ;;  %v2985_v18 = vmax.f32 %v2789_v2, 0.0 }
 0x1c6   :  { %v2788_v15 = vadd.f32 %v5888_v52, %v1661_v11  ;;  %v3083_v16 = vmax.f32 %v2887_v8, 0.0  ;;  %v2888_v17 = vadd.f32 %v5888_v52, %v2061_v14  ;;  %v2983_v21 = vmax.f32 %v2787_v6, 0.0 }
 0x1c7   :  { %v2986_v19 = vmax.f32 %v2790_v10, 0.0  ;;  %v3086_v20 = vmax.f32 %v2890_v13, 0.0 }
 0x1c8   :  { %v2984_v22 = vmax.f32 %v2788_v15, 0.0  ;;  %v3084_v23 = vmax.f32 %v2888_v17, 0.0 }
 0x1c9   :  { %v4810_v24 = vpack.c.bf16 %v2986_v19, %v2985_v18  ;;  %v5060_v25 = vpack.c.bf16 %v3086_v20, %v3085_v12 }
 0x1ca   :  { %v4805_v26 = vpack.c.bf16 %v2984_v22, %v2983_v21  ;;  %v5391_v27 = vpop.f32.mrb[88].mxu0  ;;  %v5055_v28 = vpack.c.bf16 %v3084_v23, %v3083_v16  ;;  %v5491_v29 = vpop.f32.mrb[88].mxu1 }
 0x1cb   :  { %5124 = vst [vmem:[#allocation8 + $0x158] sm:$0xff] %v4810_v24   ;;  %5174 = vst [vmem:[#allocation8 + $0x2e8] sm:$0xff] %v5060_v25   ;;  %v2793_v30 = vadd.f32 %v5888_v52, %v5391_v27  ;;  %v1674_v31 = vpop.f32.mrb[89].mxu0  ;;  %v2893_v32 = vadd.f32 %v5888_v52, %v5491_v29  ;;  %v2074_v33 = vpop.f32.mrb[89].mxu1 }
 0x1cc   :  { %5123 = vst [vmem:[#allocation8 + $0x150] sm:$0xff] %v4805_v26   ;;  %5173 = vst [vmem:[#allocation8 + $0x2e0] sm:$0xff] %v5055_v28   ;;  %v2791_v34 = vadd.f32 %v5888_v52, %v1674_v31  ;;  %v5392_v35 = vpop.f32.mrb[90].mxu0  ;;  %v2891_v36 = vadd.f32 %v5888_v52, %v2074_v33  ;;  %v5492_v37 = vpop.f32.mrb[90].mxu1 }
 0x1cd   :  { %v2794_v38 = vadd.f32 %v5888_v52, %v5392_v35  ;;  %v1677_v39 = vpop.f32.mrb[91].mxu0  ;;  %v3089_v40 = vmax.f32 %v2893_v32, 0.0  ;;  %v2894_v41 = vadd.f32 %v5888_v52, %v5492_v37  ;;  %v2077_v43 = vpop.f32.mrb[91].mxu1  ;;  %v2989_v47 = vmax.f32 %v2793_v30, 0.0 }
 0x1ce   :  { %v2792_v44 = vadd.f32 %v5888_v52, %v1677_v39  ;;  %v3087_v45 = vmax.f32 %v2891_v36, 0.0  ;;  %v2892_v46 = vadd.f32 %v5888_v52, %v2077_v43  ;;  %v2987_v50 = vmax.f32 %v2791_v34, 0.0 }
 0x1cf   :  { %v2990_v48 = vmax.f32 %v2794_v38, 0.0  ;;  %v3090_v49 = vmax.f32 %v2894_v41, 0.0 }
 0x1d0   :  { %v2988_v51 = vmax.f32 %v2792_v44, 0.0  ;;  %v3088_v42 = vmax.f32 %v2892_v46, 0.0 }
 0x1d1   :  { %v4820_v53 = vpack.c.bf16 %v2990_v48, %v2989_v47  ;;  %v5070_v54 = vpack.c.bf16 %v3090_v49, %v3089_v40 }
 0x1d2   :  { %v4815_v55 = vpack.c.bf16 %v2988_v51, %v2987_v50  ;;  %v5395_v56 = vpop.f32.mrb[92].mxu0  ;;  %v5065_v57 = vpack.c.bf16 %v3088_v42, %v3087_v45  ;;  %v5495_v58 = vpop.f32.mrb[92].mxu1 }
 0x1d3   :  { %5126 = vst [vmem:[#allocation8 + $0x168] sm:$0xff] %v4820_v53   ;;  %5176 = vst [vmem:[#allocation8 + $0x2f8] sm:$0xff] %v5070_v54   ;;  %v2797_v59 = vadd.f32 %v5888_v52, %v5395_v56  ;;  %v1690_v60 = vpop.f32.mrb[93].mxu0  ;;  %v2897_v61 = vadd.f32 %v5888_v52, %v5495_v58  ;;  %v2090_v62 = vpop.f32.mrb[93].mxu1 }
 0x1d4   :  { %5125 = vst [vmem:[#allocation8 + $0x160] sm:$0xff] %v4815_v55   ;;  %5175 = vst [vmem:[#allocation8 + $0x2f0] sm:$0xff] %v5065_v57   ;;  %v2795_v63 = vadd.f32 %v5888_v52, %v1690_v60  ;;  %v5396_v0 = vpop.f32.mrb[94].mxu0  ;;  %v2895_v1 = vadd.f32 %v5888_v52, %v2090_v62  ;;  %v5496_v2 = vpop.f32.mrb[94].mxu1 }
 0x1d5   :  { %v2798_v3 = vadd.f32 %v5888_v52, %v5396_v0  ;;  %v1693_v4 = vpop.f32.mrb[95].mxu0  ;;  %v3093_v5 = vmax.f32 %v2897_v61, 0.0  ;;  %v2898_v6 = vadd.f32 %v5888_v52, %v5496_v2  ;;  %v2093_v7 = vpop.f32.mrb[95].mxu1  ;;  %v2993_v11 = vmax.f32 %v2797_v59, 0.0 }
 0x1d6   :  { %v2796_v8 = vadd.f32 %v5888_v52, %v1693_v4  ;;  %v3091_v9 = vmax.f32 %v2895_v1, 0.0  ;;  %v2896_v10 = vadd.f32 %v5888_v52, %v2093_v7  ;;  %v2991_v14 = vmax.f32 %v2795_v63, 0.0 }
 0x1d7   :  { %v2994_v12 = vmax.f32 %v2798_v3, 0.0  ;;  %v3094_v13 = vmax.f32 %v2898_v6, 0.0 }
 0x1d8   :  { %v2992_v15 = vmax.f32 %v2796_v8, 0.0  ;;  %v3092_v16 = vmax.f32 %v2896_v10, 0.0 }
 0x1d9   :  { %v4830_v17 = vpack.c.bf16 %v2994_v12, %v2993_v11  ;;  %v5080_v18 = vpack.c.bf16 %v3094_v13, %v3093_v5 }
 0x1da   :  { %v4825_v19 = vpack.c.bf16 %v2992_v15, %v2991_v14  ;;  %v5399_v20 = vpop.f32.mrb[96].mxu0  ;;  %v5075_v21 = vpack.c.bf16 %v3092_v16, %v3091_v9 }
 0x1db   :  { %5128 = vst [vmem:[#allocation8 + $0x178] sm:$0xff] %v4830_v17   ;;  %5178 = vst [vmem:[#allocation8 + $0x308] sm:$0xff] %v5080_v18   ;;  %v2801_v22 = vadd.f32 %v5888_v52, %v5399_v20  ;;  %v1706_v23 = vpop.f32.mrb[97].mxu0 }
 0x1dc   :  { %5127 = vst [vmem:[#allocation8 + $0x170] sm:$0xff] %v4825_v19   ;;  %5177 = vst [vmem:[#allocation8 + $0x300] sm:$0xff] %v5075_v21   ;;  %v2799_v24 = vadd.f32 %v5888_v52, %v1706_v23  ;;  %v5400_v25 = vpop.f32.mrb[98].mxu0 }
 0x1dd   :  { %v2802_v26 = vadd.f32 %v5888_v52, %v5400_v25  ;;  %v1709_v27 = vpop.f32.mrb[99].mxu0  ;;  %v2997_v29 = vmax.f32 %v2801_v22, 0.0 }
 0x1de   :  { %v2800_v28 = vadd.f32 %v5888_v52, %v1709_v27  ;;  %v2995_v31 = vmax.f32 %v2799_v24, 0.0 }
 0x1df   :  { %v2998_v30 = vmax.f32 %v2802_v26, 0.0 }
 0x1e0   :  { %v2996_v32 = vmax.f32 %v2800_v28, 0.0 }
 0x1e1   :  { %v4840_v33 = vpack.c.bf16 %v2998_v30, %v2997_v29 }
 0x1e2   :  { %v4835_v34 = vpack.c.bf16 %v2996_v32, %v2995_v31 }
 0x1e3   :  { %5130 = vst [vmem:[#allocation8 + $0x188] sm:$0xff] %v4840_v33  }
 0x1e4   :  { %5129 = vst [vmem:[#allocation8 + $0x180] sm:$0xff] %v4835_v34  }
 0x1e5   :  { %5680 = shalt.err (!%p5677_p6)
}
 0x1e6   :  { %s5681_s17 = scalar_lea.hbm %s5976_s3, 12544 }
 0x1e7   :  { %p5682_p7 = scmp.ne.s32.totalorder %s5976_s3, %s5681_s17  ;;  %p5685_p8 = scmp.lt.u32.totalorder %s5681_s17, %s5976_s3 }
 0x1e9   :  { %p5687_p9 = pnand %p5685_p8, %p5682_p7 }
 0x1eb   :  { %5690 = shalt.err (!%p5687_p9)
}
 0x1ec   :  { %4086 = dma.vmem_to_hbm [thread:$0]  %s4081_s13, 12544, %s5976_s3, [#allocation5], %s5698_s22, %s5698_s22, %s5699_s23  }
 0x1ed   :  { %5695 = dma.done.wait [#allocation5], 12544  }
 0x1ee   :  { %5696 = vsyncadd [#allocation5], 4294954752 }
 0x1ef   :  { %4090 = vsyncpa [#allocation4], 1 }
 0x1f0   :  { %4091 = vsyncpa [#allocation7], 1 }
 0x1f1   :  { %4092 = vsyncpa [#allocation5], 1 }

</bundles_post_ra>
